<compile_context>
chip_gen: v6e
topology: v6e:2x2x1
jax: 0.10.0
libtpu: 0.0.40
codegen_flags: <defaults>
</compile_context>

<pallas_src>
import math

import jax
import jax.numpy as jnp
from jax.experimental import pallas as pl
from jax.experimental.pallas import tpu as pltpu

# ----- synthetic model hyper-parameters ----------------------------------------
VOCAB = 64
B, S, H = 2, 8, 32          # batch, seq, hidden
BS = B * S                  # flattened tokens
NUM_HEADS = 4
HEAD_DIM = H // NUM_HEADS
INTER = 64                  # FFN intermediate size (true)
NUM_LAYERS = 2
NUM_LABELS = 2
LN_EPS = 1e-12
NEG_INF = -1e9

HP = 128                    # lane-padded hidden / intermediate width
LANE = 128
W_COLS = 6 * HP             # [ Wq | Wk | Wv | Wo | W1 | W2 ], each HP lanes
V_COLS = 10 * HP            # [ bq | bk | bv | bo | ln1g | ln1b | b1 | b2 | ln2g | ln2b ]
MISC_COLS = 4 * HP          # [ emb_ln_g | emb_ln_b | cls_b | valid_lane_mask ]


# ------------------------------- kernel ----------------------------------------
def _ln(x, g, b, lane_mask):
    """LayerNorm over the TRUE hidden width H. Padded lanes of x/g/b are zero, so the
    mean is exact; centered values are masked so variance excludes padded lanes and
    the output keeps zeros in the padded lanes."""
    inv_h = 1.0 / float(H)
    mu = jnp.sum(x, axis=-1, keepdims=True) * inv_h
    d = (x - mu) * lane_mask
    var = jnp.sum(d * d, axis=-1, keepdims=True) * inv_h
    return d * jax.lax.rsqrt(var + LN_EPS) * g + b


def fused_classifier_kernel(x_emb_ref, bias_ref, hmask_ref, w_ref, v_ref,
                            clsw_ref, misc_ref, logits_ref, cls_ref, x_vmem):
    """One grid step == one encoder layer.

    x_emb_ref: [BS, HP]        lane-padded token+position embeddings
    bias_ref:  [NH*BS, BS]     additive attention bias (0 / -1e9), tiled over heads
    hmask_ref: [NH*BS, HP]     head/column mask (1 where column belongs to the row's head)
    w_ref:     [HP, 6*HP]      this layer's weight slab  (Wq|Wk|Wv|Wo|W1|W2)
    v_ref:     [1, 10*HP]      this layer's bias / LayerNorm slab
    clsw_ref:  [HP, 128]       classification head weight (lane padded)
    misc_ref:  [1, 4*HP]       emb LN gamma/beta, cls bias, valid-lane mask
    outputs:   logits_ref [B,128], cls_ref [B,128] (wrapper slices padding off)
    x_vmem:    [BS, HP]        resident activation carried across layers
    """
    layer = pl.program_id(0)
    lane_mask = misc_ref[0:1, 3 * HP:4 * HP]

    # ---- layer-0 prologue: embedding LayerNorm into the resident activation ----
    @pl.when(layer == 0)
    def _():
        x_vmem[...] = _ln(x_emb_ref[...], misc_ref[0:1, 0:HP],
                          misc_ref[0:1, HP:2 * HP], lane_mask)

    x = x_vmem[...]
    hmask = hmask_ref[...]

    # static lane slices (128-aligned) out of the packed slabs
    wqkv = w_ref[:, 0:3 * HP]
    wo = w_ref[:, 3 * HP:4 * HP]
    w1 = w_ref[:, 4 * HP:5 * HP]
    w2 = w_ref[:, 5 * HP:6 * HP]
    bqkv = v_ref[0:1, 0:3 * HP]
    bo = v_ref[0:1, 3 * HP:4 * HP]
    ln1g = v_ref[0:1, 4 * HP:5 * HP]
    ln1b = v_ref[0:1, 5 * HP:6 * HP]
    b1 = v_ref[0:1, 6 * HP:7 * HP]
    b2 = v_ref[0:1, 7 * HP:8 * HP]
    ln2g = v_ref[0:1, 8 * HP:9 * HP]
    ln2b = v_ref[0:1, 9 * HP:10 * HP]

    # ---- multi-head self-attention: heads batched on the sublane axis ----
    qkv = jnp.dot(x, wqkv, preferred_element_type=jnp.float32) + bqkv     # [BS, 3*HP]
    q = qkv[:, 0:HP]
    k = qkv[:, HP:2 * HP]
    v = qkv[:, 2 * HP:3 * HP]
    # Row h*BS+i holds q_i restricted (by hmask) to head h's columns, so a single
    # matmul against full K yields every head's scores at once.  1/sqrt(dh) is
    # already folded into Wq.
    q_st = jnp.concatenate([q] * NUM_HEADS, axis=0) * hmask               # [NH*BS, HP]
    s = jax.lax.dot_general(q_st, k, (((1,), (1,)), ((), ())),
                            preferred_element_type=jnp.float32)            # [NH*BS, BS]
    s = s + bias_ref[...]
    # merged softmax: one max / exp / sum / reciprocal for all heads
    s = s - jnp.max(s, axis=-1, keepdims=True)
    p = jnp.exp(s)
    p = p * pl.reciprocal(jnp.sum(p, axis=-1, keepdims=True), approx=True)
    # P @ V for all heads; masking + summing the per-head row blocks reconstructs the
    # lane-concatenated multi-head context with no lane concatenates.
    ctx_all = jnp.dot(p, v, preferred_element_type=jnp.float32) * hmask    # [NH*BS, HP]
    ctx = ctx_all[0:BS]
    for h in range(1, NUM_HEADS):
        ctx = ctx + ctx_all[h * BS:(h + 1) * BS]                           # [BS, HP]
    attn = jnp.dot(ctx, wo, preferred_element_type=jnp.float32) + bo
    h1 = _ln(x + attn, ln1g, ln1b, lane_mask)

    # ---- feed-forward ----
    ff = jnp.dot(h1, w1, preferred_element_type=jnp.float32) + b1
    # TODO(synk): HF BERT uses exact (erf) GELU; tanh approximation kept for
    # guaranteed Mosaic lowering -> tiny numeric drift vs the torch reference.
    ff = jax.nn.gelu(ff, approximate=True)
    ff = jnp.dot(ff, w2, preferred_element_type=jnp.float32) + b2
    x_new = _ln(h1 + ff, ln2g, ln2b, lane_mask)
    x_vmem[...] = x_new

    # ---- last-layer epilogue: CLS gather -> dropout(identity, eval) -> Linear ----
    @pl.when(layer == pl.num_programs(0) - 1)
    def _():
        # one-hot selection matmul gathers row b*S for every batch (MXU, no relayout)
        rows = jax.lax.broadcasted_iota(jnp.int32, (B, BS), 0)
        cols = jax.lax.broadcasted_iota(jnp.int32, (B, BS), 1)
        sel = (cols == rows * S).astype(jnp.float32)                       # [B, BS]
        cls = jnp.dot(sel, x_new, preferred_element_type=jnp.float32)      # [B, HP]
        # TODO(synk): training-mode Dropout(p=0.3) RNG cannot reproduce torch's stream;
        # eval-mode identity is used.
        logits_ref[...] = (jnp.dot(cls, clsw_ref[...],
                                   preferred_element_type=jnp.float32)
                           + misc_ref[0:1, 2 * HP:3 * HP])
        cls_ref[...] = cls


# --------------------------- parameters & forward ------------------------------
def init_params(key):
    ks = jax.random.split(key, 9)

    def nrm(k, shape):
        return (0.02 * jax.random.normal(k, shape)).astype(jnp.float32)

    def pad_mat(w):  # zero-pad [L, r, c] -> [L, HP, HP]
        out = jnp.zeros((NUM_LAYERS, HP, HP), jnp.float32)
        return out.at[:, :w.shape[1], :w.shape[2]].set(w)

    scale = 1.0 / math.sqrt(HEAD_DIM)
    wq = nrm(ks[2], (NUM_LAYERS, H, H)) * scale        # fold 1/sqrt(dh) into Wq
    wk = nrm(ks[3], (NUM_LAYERS, H, H))
    wv = nrm(ks[4], (NUM_LAYERS, H, H))
    w_slab = jnp.concatenate(
        [pad_mat(wq), pad_mat(wk), pad_mat(wv),
         pad_mat(nrm(ks[6], (NUM_LAYERS, H, H))),       # Wo
         pad_mat(nrm(ks[7], (NUM_LAYERS, H, INTER))),   # W1
         pad_mat(nrm(ks[8], (NUM_LAYERS, INTER, H)))],  # W2
        axis=-1)                                         # [L, HP, 6*HP]

    # vector slab rows: [bq, bk, bv, bo, ln1_g, ln1_b, b1, b2, ln2_g, ln2_b]
    # (all biases are zero; the Q bias would also carry the folded 1/sqrt(dh) scale)
    v_rows = jnp.zeros((NUM_LAYERS, 10, HP), jnp.float32)
    v_rows = v_rows.at[:, 4, :H].set(1.0)               # ln1 gamma
    v_rows = v_rows.at[:, 8, :H].set(1.0)               # ln2 gamma
    v_slab = v_rows.reshape(NUM_LAYERS, 1, V_COLS)

    # misc rows: [emb_ln_g, emb_ln_b, cls_b, valid-lane mask]
    misc = jnp.zeros((4, HP), jnp.float32)
    misc = misc.at[0, :H].set(1.0)
    misc = misc.at[3, :H].set(1.0)
    misc_vec = misc.reshape(1, MISC_COLS)

    cls_w = jnp.zeros((HP, LANE), jnp.float32).at[:H, :NUM_LABELS].set(
        nrm(ks[5], (H, NUM_LABELS)))

    return dict(
        word_emb=nrm(ks[0], (VOCAB, H)),
        pos_emb=nrm(ks[1], (S, H)),
        w_slab=w_slab, v_slab=v_slab, misc=misc_vec, cls_w=cls_w)


def classifier_forward(params, input_ids, attention_mask):
    # ----- plain-JAX glue: embedding gather, lane padding, attention masks -----
    x = jnp.take(params["word_emb"], input_ids, axis=0) + params["pos_emb"][None, :, :]
    x = x.reshape(BS, H).astype(jnp.float32)
    x_pad = jnp.zeros((BS, HP), jnp.float32).at[:, :H].set(x)

    key_valid = attention_mask.astype(jnp.float32).reshape(BS)          # [BS]
    tok_batch = jnp.arange(BS, dtype=jnp.int32) // S
    same_batch = tok_batch[:, None] == tok_batch[None, :]
    valid = same_batch & (key_valid[None, :] > 0)
    bias = jnp.where(valid, 0.0, NEG_INF).astype(jnp.float32)           # [BS, BS]
    bias_heads = jnp.tile(bias, (NUM_HEADS, 1))                         # [NH*BS, BS]

    row_head = jnp.arange(NUM_HEADS * BS, dtype=jnp.int32)[:, None] // BS
    col_head = jnp.arange(HP, dtype=jnp.int32)[None, :] // HEAD_DIM
    col_valid = jnp.arange(HP, dtype=jnp.int32)[None, :] < H
    head_mask = ((row_head == col_head) & col_valid).astype(jnp.float32)  # [NH*BS, HP]

    inputs = (x_pad, bias_heads, head_mask,
              params["w_slab"], params["v_slab"], params["cls_w"], params["misc"])

    out_shapes = (jax.ShapeDtypeStruct((B, LANE), jnp.float32),   # logits (lane padded)
                  jax.ShapeDtypeStruct((B, LANE), jnp.float32))   # cls    (lane padded)

    grid_spec = pltpu.PrefetchScalarGridSpec(
        num_scalar_prefetch=0,
        grid=(NUM_LAYERS,),
        in_specs=[
            pl.BlockSpec((BS, HP), lambda l: (0, 0)),                   # x_emb (resident)
            pl.BlockSpec((NUM_HEADS * BS, BS), lambda l: (0, 0)),       # bias  (resident)
            pl.BlockSpec((NUM_HEADS * BS, HP), lambda l: (0, 0)),       # head mask
            pl.BlockSpec((None, HP, W_COLS), lambda l: (l, 0, 0)),      # per-layer weights
            pl.BlockSpec((None, 1, V_COLS), lambda l: (l, 0, 0)),       # per-layer vectors
            pl.BlockSpec((HP, LANE), lambda l: (0, 0)),                 # cls head weight
            pl.BlockSpec((1, MISC_COLS), lambda l: (0, 0)),             # misc slab
        ],
        out_specs=(
            pl.BlockSpec((B, LANE), lambda l: (0, 0)),
            pl.BlockSpec((B, LANE), lambda l: (0, 0)),
        ),
        scratch_shapes=[pltpu.VMEM((BS, HP), jnp.float32)],             # resident activation
    )

    logits_pad, cls_pad = pl.pallas_call(
        fused_classifier_kernel,
        grid_spec=grid_spec,
        out_shape=out_shapes,
        compiler_params=pltpu.CompilerParams(dimension_semantics=("arbitrary",)),
    )(*inputs)

    # slice lane padding back off in the wrapper
    return logits_pad[:, :NUM_LABELS], cls_pad[:, :H]


if __name__ == "__main__":
    key = jax.random.PRNGKey(0)
    pkey, ikey = jax.random.split(key)
    params = init_params(pkey)

    input_ids = jax.random.randint(ikey, (B, S), 0, VOCAB, dtype=jnp.int32)
    attention_mask = jnp.array([[1] * S, [1] * (S - 2) + [0] * 2], dtype=jnp.int32)

    fwd = jax.jit(classifier_forward)
    logits, encoded_cls = fwd(params, input_ids, attention_mask)
    jax.block_until_ready((logits, encoded_cls))

    assert logits.shape == (B, NUM_LABELS)
    assert encoded_cls.shape == (B, H)
    assert bool(jnp.all(jnp.isfinite(logits))) and bool(jnp.all(jnp.isfinite(encoded_cls)))
    print("KERNEL_OK")
</pallas_src>

<mosaic_0001>
module attributes {stable_mosaic.version = 11 : i64} {
  func.func @fused_classifier_kernel(%arg0: i32, %arg1: memref<16x128xf32, #tpu.memory_space<vmem>>, %arg2: memref<64x16xf32, #tpu.memory_space<vmem>>, %arg3: memref<64x128xf32, #tpu.memory_space<vmem>>, %arg4: memref<1x128x768xf32, #tpu.memory_space<vmem>>, %arg5: memref<1x1x1280xf32, #tpu.memory_space<vmem>>, %arg6: memref<128x128xf32, #tpu.memory_space<vmem>>, %arg7: memref<1x512xf32, #tpu.memory_space<vmem>>, %arg8: memref<2x128xf32, #tpu.memory_space<vmem>>, %arg9: memref<2x128xf32, #tpu.memory_space<vmem>>, %arg10: memref<16x128xf32, #tpu.memory_space<vmem>>) attributes {dimension_semantics = [#tpu.dimension_semantics<arbitrary>], iteration_bounds = array<i64: 2>, scalar_prefetch = 0 : i64, scratch_operands = 1 : i64, tpu.core_type = #tpu.core_type<tc>, window_params = [{pipeline_mode = #tpu.pipeline_mode<synchronous>, transform_indices = @transform_0, window_bounds = array<i64: 16, 128>}, {pipeline_mode = #tpu.pipeline_mode<synchronous>, transform_indices = @transform_1, window_bounds = array<i64: 64, 16>}, {pipeline_mode = #tpu.pipeline_mode<synchronous>, transform_indices = @transform_2, window_bounds = array<i64: 64, 128>}, {transform_indices = @transform_3, window_bounds = array<i64: 1, 128, 768>}, {transform_indices = @transform_4, window_bounds = array<i64: 1, 1, 1280>}, {pipeline_mode = #tpu.pipeline_mode<synchronous>, transform_indices = @transform_5, window_bounds = array<i64: 128, 128>}, {pipeline_mode = #tpu.pipeline_mode<synchronous>, transform_indices = @transform_6, window_bounds = array<i64: 1, 512>}, {pipeline_mode = #tpu.pipeline_mode<synchronous>, transform_indices = @transform_7, window_bounds = array<i64: 2, 128>}, {pipeline_mode = #tpu.pipeline_mode<synchronous>, transform_indices = @transform_8, window_bounds = array<i64: 2, 128>}]} {
    %c0 = arith.constant 0 : index
    %c384 = arith.constant 384 : index
    %0 = vector.load %arg7[%c0, %c384] : memref<1x512xf32, #tpu.memory_space<vmem>>, vector<1x128xf32>
    %c0_i32 = arith.constant 0 : i32
    %1 = arith.cmpi eq, %arg0, %c0_i32 : i32
    %2 = arith.extui %1 : i1 to i32
    %c0_i32_0 = arith.constant 0 : i32
    %3 = arith.cmpi ne, %2, %c0_i32_0 : i32
    scf.if %3 {
      %c0_61 = arith.constant 0 : index
      %c0_62 = arith.constant 0 : index
      %132 = vector.load %arg1[%c0_61, %c0_62] : memref<16x128xf32, #tpu.memory_space<vmem>>, vector<16x128xf32>
      %c0_63 = arith.constant 0 : index
      %c0_64 = arith.constant 0 : index
      %133 = vector.load %arg7[%c0_63, %c0_64] : memref<1x512xf32, #tpu.memory_space<vmem>>, vector<1x128xf32>
      %c0_65 = arith.constant 0 : index
      %c128 = arith.constant 128 : index
      %134 = vector.load %arg7[%c0_65, %c128] : memref<1x512xf32, #tpu.memory_space<vmem>>, vector<1x128xf32>
      %cst_66 = arith.constant dense<0.000000e+00> : vector<16xf32>
      %135 = vector.multi_reduction <add>, %132, %cst_66 [1] : vector<16x128xf32> to vector<16xf32>
      %136 = vector.shape_cast %135 : vector<16xf32> to vector<16x1xf32>
      %cst_67 = arith.constant 3.125000e-02 : f32
      %137 = vector.broadcast %cst_67 : f32 to vector<16x1xf32>
      %138 = arith.mulf %136, %137 : vector<16x1xf32>
      %139 = vector.broadcast %138 : vector<16x1xf32> to vector<16x128xf32>
      %140 = arith.subf %132, %139 : vector<16x128xf32>
      %141 = vector.broadcast %0 : vector<1x128xf32> to vector<16x128xf32>
      %142 = arith.mulf %140, %141 : vector<16x128xf32>
      %143 = arith.mulf %142, %142 : vector<16x128xf32>
      %cst_68 = arith.constant dense<0.000000e+00> : vector<16xf32>
      %144 = vector.multi_reduction <add>, %143, %cst_68 [1] : vector<16x128xf32> to vector<16xf32>
      %145 = vector.shape_cast %144 : vector<16xf32> to vector<16x1xf32>
      %cst_69 = arith.constant 3.125000e-02 : f32
      %146 = vector.broadcast %cst_69 : f32 to vector<16x1xf32>
      %147 = arith.mulf %145, %146 : vector<16x1xf32>
      %cst_70 = arith.constant 9.99999996E-13 : f32
      %148 = vector.broadcast %cst_70 : f32 to vector<16x1xf32>
      %149 = arith.addf %147, %148 : vector<16x1xf32>
      %150 = math.rsqrt %149 : vector<16x1xf32>
      %151 = vector.broadcast %150 : vector<16x1xf32> to vector<16x128xf32>
      %152 = arith.mulf %142, %151 : vector<16x128xf32>
      %153 = vector.broadcast %133 : vector<1x128xf32> to vector<16x128xf32>
      %154 = arith.mulf %152, %153 : vector<16x128xf32>
      %155 = vector.broadcast %134 : vector<1x128xf32> to vector<16x128xf32>
      %156 = arith.addf %154, %155 : vector<16x128xf32>
      %c0_71 = arith.constant 0 : index
      %c0_72 = arith.constant 0 : index
      %157 = vector.load %arg10[%c0_71, %c0_72] : memref<16x128xf32, #tpu.memory_space<vmem>>, vector<16x128xf32>
      tpu.vector_store %arg10[%c0_71, %c0_72], %156 {strides = array<i32>} : memref<16x128xf32, #tpu.memory_space<vmem>>, vector<16x128xf32>,
    } else {
    }
    %c0_1 = arith.constant 0 : index
    %c0_2 = arith.constant 0 : index
    %4 = vector.load %arg10[%c0_1, %c0_2] : memref<16x128xf32, #tpu.memory_space<vmem>>, vector<16x128xf32>
    %c0_3 = arith.constant 0 : index
    %c0_4 = arith.constant 0 : index
    %5 = vector.load %arg3[%c0_3, %c0_4] : memref<64x128xf32, #tpu.memory_space<vmem>>, vector<64x128xf32>
    %c0_5 = arith.constant 0 : index
    %c0_6 = arith.constant 0 : index
    %c0_7 = arith.constant 0 : index
    %6 = vector.load %arg4[%c0_5, %c0_6, %c0_7] : memref<1x128x768xf32, #tpu.memory_space<vmem>>, vector<1x128x384xf32>
    %7 = vector.shape_cast %6 : vector<1x128x384xf32> to vector<128x384xf32>
    %c0_8 = arith.constant 0 : index
    %c0_9 = arith.constant 0 : index
    %c384_10 = arith.constant 384 : index
    %8 = vector.load %arg4[%c0_8, %c0_9, %c384_10] : memref<1x128x768xf32, #tpu.memory_space<vmem>>, vector<1x128x128xf32>
    %9 = vector.shape_cast %8 : vector<1x128x128xf32> to vector<128x128xf32>
    %c0_11 = arith.constant 0 : index
    %c0_12 = arith.constant 0 : index
    %c512 = arith.constant 512 : index
    %10 = vector.load %arg4[%c0_11, %c0_12, %c512] : memref<1x128x768xf32, #tpu.memory_space<vmem>>, vector<1x128x128xf32>
    %11 = vector.shape_cast %10 : vector<1x128x128xf32> to vector<128x128xf32>
    %c0_13 = arith.constant 0 : index
    %c0_14 = arith.constant 0 : index
    %c640 = arith.constant 640 : index
    %12 = vector.load %arg4[%c0_13, %c0_14, %c640] : memref<1x128x768xf32, #tpu.memory_space<vmem>>, vector<1x128x128xf32>
    %13 = vector.shape_cast %12 : vector<1x128x128xf32> to vector<128x128xf32>
    %c0_15 = arith.constant 0 : index
    %c0_16 = arith.constant 0 : index
    %c0_17 = arith.constant 0 : index
    %14 = vector.load %arg5[%c0_15, %c0_16, %c0_17] : memref<1x1x1280xf32, #tpu.memory_space<vmem>>, vector<1x1x384xf32>
    %15 = vector.shape_cast %14 : vector<1x1x384xf32> to vector<1x384xf32>
    %c0_18 = arith.constant 0 : index
    %c0_19 = arith.constant 0 : index
    %c384_20 = arith.constant 384 : index
    %16 = vector.load %arg5[%c0_18, %c0_19, %c384_20] : memref<1x1x1280xf32, #tpu.memory_space<vmem>>, vector<1x1x128xf32>
    %17 = vector.shape_cast %16 : vector<1x1x128xf32> to vector<1x128xf32>
    %c0_21 = arith.constant 0 : index
    %c0_22 = arith.constant 0 : index
    %c512_23 = arith.constant 512 : index
    %18 = vector.load %arg5[%c0_21, %c0_22, %c512_23] : memref<1x1x1280xf32, #tpu.memory_space<vmem>>, vector<1x1x128xf32>
    %19 = vector.shape_cast %18 : vector<1x1x128xf32> to vector<1x128xf32>
    %c0_24 = arith.constant 0 : index
    %c0_25 = arith.constant 0 : index
    %c640_26 = arith.constant 640 : index
    %20 = vector.load %arg5[%c0_24, %c0_25, %c640_26] : memref<1x1x1280xf32, #tpu.memory_space<vmem>>, vector<1x1x128xf32>
    %21 = vector.shape_cast %20 : vector<1x1x128xf32> to vector<1x128xf32>
    %c0_27 = arith.constant 0 : index
    %c0_28 = arith.constant 0 : index
    %c768 = arith.constant 768 : index
    %22 = vector.load %arg5[%c0_27, %c0_28, %c768] : memref<1x1x1280xf32, #tpu.memory_space<vmem>>, vector<1x1x128xf32>
    %23 = vector.shape_cast %22 : vector<1x1x128xf32> to vector<1x128xf32>
    %c0_29 = arith.constant 0 : index
    %c0_30 = arith.constant 0 : index
    %c896 = arith.constant 896 : index
    %24 = vector.load %arg5[%c0_29, %c0_30, %c896] : memref<1x1x1280xf32, #tpu.memory_space<vmem>>, vector<1x1x128xf32>
    %25 = vector.shape_cast %24 : vector<1x1x128xf32> to vector<1x128xf32>
    %c0_31 = arith.constant 0 : index
    %c0_32 = arith.constant 0 : index
    %c1024 = arith.constant 1024 : index
    %26 = vector.load %arg5[%c0_31, %c0_32, %c1024] : memref<1x1x1280xf32, #tpu.memory_space<vmem>>, vector<1x1x128xf32>
    %27 = vector.shape_cast %26 : vector<1x1x128xf32> to vector<1x128xf32>
    %c0_33 = arith.constant 0 : index
    %c0_34 = arith.constant 0 : index
    %c1152 = arith.constant 1152 : index
    %28 = vector.load %arg5[%c0_33, %c0_34, %c1152] : memref<1x1x1280xf32, #tpu.memory_space<vmem>>, vector<1x1x128xf32>
    %29 = vector.shape_cast %28 : vector<1x1x128xf32> to vector<1x128xf32>
    %cst = arith.constant dense<0.000000e+00> : vector<16x384xf32>
    %30 = tpu.matmul %4, %7, %cst {dimension_numbers = #tpu.dot_dimension_numbers<[1], [0], [0], [1], [0, 0, 1, 1], [], []>} : vector<16x128xf32>, vector<128x384xf32>, vector<16x384xf32> -> vector<16x384xf32>
    %31 = vector.broadcast %15 : vector<1x384xf32> to vector<16x384xf32>
    %32 = arith.addf %30, %31 : vector<16x384xf32>
    %33 = vector.extract_strided_slice %32 {offsets = [0, 0], sizes = [16, 128], strides = [1, 1]} : vector<16x384xf32> to vector<16x128xf32>
    %34 = vector.extract_strided_slice %32 {offsets = [0, 128], sizes = [16, 128], strides = [1, 1]} : vector<16x384xf32> to vector<16x128xf32>
    %35 = vector.extract_strided_slice %32 {offsets = [0, 256], sizes = [16, 128], strides = [1, 1]} : vector<16x384xf32> to vector<16x128xf32>
    %36 = tpu.concatenate %33, %33, %33, %33 in 0 : vector<16x128xf32>, vector<16x128xf32>, vector<16x128xf32>, vector<16x128xf32> -> vector<64x128xf32>
    %37 = arith.mulf %36, %5 : vector<64x128xf32>
    %cst_35 = arith.constant dense<0.000000e+00> : vector<64x16xf32>
    %38 = tpu.matmul %37, %34, %cst_35 {dimension_numbers = #tpu.dot_dimension_numbers<[1], [1], [0], [0], [0, 0, 1, 0], [], []>} : vector<64x128xf32>, vector<16x128xf32>, vector<64x16xf32> -> vector<64x16xf32>
    %c0_36 = arith.constant 0 : index
    %c0_37 = arith.constant 0 : index
    %39 = vector.load %arg2[%c0_36, %c0_37] : memref<64x16xf32, #tpu.memory_space<vmem>>, vector<64x16xf32>
    %40 = arith.addf %38, %39 : vector<64x16xf32>
    %cst_38 = arith.constant dense<0xFF800000> : vector<64xf32>
    %41 = vector.multi_reduction <maximumf>, %40, %cst_38 [1] : vector<64x16xf32> to vector<64xf32>
    %42 = vector.shape_cast %41 : vector<64xf32> to vector<64x1xf32>
    %43 = vector.broadcast %42 : vector<64x1xf32> to vector<64x16xf32>
    %44 = arith.subf %40, %43 : vector<64x16xf32>
    %45 = math.exp %44 : vector<64x16xf32>
    %cst_39 = arith.constant dense<0.000000e+00> : vector<64xf32>
    %46 = vector.multi_reduction <add>, %45, %cst_39 [1] : vector<64x16xf32> to vector<64xf32>
    %47 = vector.shape_cast %46 : vector<64xf32> to vector<64x1xf32>
    %48 = tpu.reciprocal %47 {approx = true} : vector<64x1xf32> -> vector<64x1xf32>
    %49 = vector.broadcast %48 : vector<64x1xf32> to vector<64x16xf32>
    %50 = arith.mulf %45, %49 : vector<64x16xf32>
    %cst_40 = arith.constant dense<0.000000e+00> : vector<64x128xf32>
    %51 = tpu.matmul %50, %35, %cst_40 {dimension_numbers = #tpu.dot_dimension_numbers<[1], [0], [0], [1], [0, 0, 1, 1], [], []>} : vector<64x16xf32>, vector<16x128xf32>, vector<64x128xf32> -> vector<64x128xf32>
    %52 = arith.mulf %51, %5 : vector<64x128xf32>
    %53 = vector.extract_strided_slice %52 {offsets = [0, 0], sizes = [16, 128], strides = [1, 1]} : vector<64x128xf32> to vector<16x128xf32>
    %54 = vector.extract_strided_slice %52 {offsets = [16, 0], sizes = [16, 128], strides = [1, 1]} : vector<64x128xf32> to vector<16x128xf32>
    %55 = arith.addf %53, %54 : vector<16x128xf32>
    %56 = vector.extract_strided_slice %52 {offsets = [32, 0], sizes = [16, 128], strides = [1, 1]} : vector<64x128xf32> to vector<16x128xf32>
    %57 = arith.addf %55, %56 : vector<16x128xf32>
    %58 = vector.extract_strided_slice %52 {offsets = [48, 0], sizes = [16, 128], strides = [1, 1]} : vector<64x128xf32> to vector<16x128xf32>
    %59 = arith.addf %57, %58 : vector<16x128xf32>
    %cst_41 = arith.constant dense<0.000000e+00> : vector<16x128xf32>
    %60 = tpu.matmul %59, %9, %cst_41 {dimension_numbers = #tpu.dot_dimension_numbers<[1], [0], [0], [1], [0, 0, 1, 1], [], []>} : vector<16x128xf32>, vector<128x128xf32>, vector<16x128xf32> -> vector<16x128xf32>
    %61 = vector.broadcast %17 : vector<1x128xf32> to vector<16x128xf32>
    %62 = arith.addf %60, %61 : vector<16x128xf32>
    %63 = arith.addf %4, %62 : vector<16x128xf32>
    %cst_42 = arith.constant dense<0.000000e+00> : vector<16xf32>
    %64 = vector.multi_reduction <add>, %63, %cst_42 [1] : vector<16x128xf32> to vector<16xf32>
    %65 = vector.shape_cast %64 : vector<16xf32> to vector<16x1xf32>
    %cst_43 = arith.constant 3.125000e-02 : f32
    %66 = vector.broadcast %cst_43 : f32 to vector<16x1xf32>
    %67 = arith.mulf %65, %66 : vector<16x1xf32>
    %68 = vector.broadcast %67 : vector<16x1xf32> to vector<16x128xf32>
    %69 = arith.subf %63, %68 : vector<16x128xf32>
    %70 = vector.broadcast %0 : vector<1x128xf32> to vector<16x128xf32>
    %71 = arith.mulf %69, %70 : vector<16x128xf32>
    %72 = arith.mulf %71, %71 : vector<16x128xf32>
    %cst_44 = arith.constant dense<0.000000e+00> : vector<16xf32>
    %73 = vector.multi_reduction <add>, %72, %cst_44 [1] : vector<16x128xf32> to vector<16xf32>
    %74 = vector.shape_cast %73 : vector<16xf32> to vector<16x1xf32>
    %cst_45 = arith.constant 3.125000e-02 : f32
    %75 = vector.broadcast %cst_45 : f32 to vector<16x1xf32>
    %76 = arith.mulf %74, %75 : vector<16x1xf32>
    %cst_46 = arith.constant 9.99999996E-13 : f32
    %77 = vector.broadcast %cst_46 : f32 to vector<16x1xf32>
    %78 = arith.addf %76, %77 : vector<16x1xf32>
    %79 = math.rsqrt %78 : vector<16x1xf32>
    %80 = vector.broadcast %79 : vector<16x1xf32> to vector<16x128xf32>
    %81 = arith.mulf %71, %80 : vector<16x128xf32>
    %82 = vector.broadcast %19 : vector<1x128xf32> to vector<16x128xf32>
    %83 = arith.mulf %81, %82 : vector<16x128xf32>
    %84 = vector.broadcast %21 : vector<1x128xf32> to vector<16x128xf32>
    %85 = arith.addf %83, %84 : vector<16x128xf32>
    %cst_47 = arith.constant dense<0.000000e+00> : vector<16x128xf32>
    %86 = tpu.matmul %85, %11, %cst_47 {dimension_numbers = #tpu.dot_dimension_numbers<[1], [0], [0], [1], [0, 0, 1, 1], [], []>} : vector<16x128xf32>, vector<128x128xf32>, vector<16x128xf32> -> vector<16x128xf32>
    %87 = vector.broadcast %23 : vector<1x128xf32> to vector<16x128xf32>
    %88 = arith.addf %86, %87 : vector<16x128xf32>
    %89 = arith.mulf %88, %88 : vector<16x128xf32>
    %90 = arith.mulf %88, %89 : vector<16x128xf32>
    %cst_48 = arith.constant 4.471500e-02 : f32
    %91 = vector.broadcast %cst_48 : f32 to vector<16x128xf32>
    %92 = arith.mulf %91, %90 : vector<16x128xf32>
    %93 = arith.addf %88, %92 : vector<16x128xf32>
    %cst_49 = arith.constant 0.797884583 : f32
    %94 = vector.broadcast %cst_49 : f32 to vector<16x128xf32>
    %95 = arith.mulf %94, %93 : vector<16x128xf32>
    %96 = math.tanh %95 : vector<16x128xf32>
    %cst_50 = arith.constant 1.000000e+00 : f32
    %97 = vector.broadcast %cst_50 : f32 to vector<16x128xf32>
    %98 = arith.addf %97, %96 : vector<16x128xf32>
    %cst_51 = arith.constant 5.000000e-01 : f32
    %99 = vector.broadcast %cst_51 : f32 to vector<16x128xf32>
    %100 = arith.mulf %99, %98 : vector<16x128xf32>
    %101 = arith.mulf %88, %100 : vector<16x128xf32>
    %cst_52 = arith.constant dense<0.000000e+00> : vector<16x128xf32>
    %102 = tpu.matmul %101, %13, %cst_52 {dimension_numbers = #tpu.dot_dimension_numbers<[1], [0], [0], [1], [0, 0, 1, 1], [], []>} : vector<16x128xf32>, vector<128x128xf32>, vector<16x128xf32> -> vector<16x128xf32>
    %103 = vector.broadcast %25 : vector<1x128xf32> to vector<16x128xf32>
    %104 = arith.addf %102, %103 : vector<16x128xf32>
    %105 = arith.addf %85, %104 : vector<16x128xf32>
    %cst_53 = arith.constant dense<0.000000e+00> : vector<16xf32>
    %106 = vector.multi_reduction <add>, %105, %cst_53 [1] : vector<16x128xf32> to vector<16xf32>
    %107 = vector.shape_cast %106 : vector<16xf32> to vector<16x1xf32>
    %cst_54 = arith.constant 3.125000e-02 : f32
    %108 = vector.broadcast %cst_54 : f32 to vector<16x1xf32>
    %109 = arith.mulf %107, %108 : vector<16x1xf32>
    %110 = vector.broadcast %109 : vector<16x1xf32> to vector<16x128xf32>
    %111 = arith.subf %105, %110 : vector<16x128xf32>
    %112 = vector.broadcast %0 : vector<1x128xf32> to vector<16x128xf32>
    %113 = arith.mulf %111, %112 : vector<16x128xf32>
    %114 = arith.mulf %113, %113 : vector<16x128xf32>
    %cst_55 = arith.constant dense<0.000000e+00> : vector<16xf32>
    %115 = vector.multi_reduction <add>, %114, %cst_55 [1] : vector<16x128xf32> to vector<16xf32>
    %116 = vector.shape_cast %115 : vector<16xf32> to vector<16x1xf32>
    %cst_56 = arith.constant 3.125000e-02 : f32
    %117 = vector.broadcast %cst_56 : f32 to vector<16x1xf32>
    %118 = arith.mulf %116, %117 : vector<16x1xf32>
    %cst_57 = arith.constant 9.99999996E-13 : f32
    %119 = vector.broadcast %cst_57 : f32 to vector<16x1xf32>
    %120 = arith.addf %118, %119 : vector<16x1xf32>
    %121 = math.rsqrt %120 : vector<16x1xf32>
    %122 = vector.broadcast %121 : vector<16x1xf32> to vector<16x128xf32>
    %123 = arith.mulf %113, %122 : vector<16x128xf32>
    %124 = vector.broadcast %27 : vector<1x128xf32> to vector<16x128xf32>
    %125 = arith.mulf %123, %124 : vector<16x128xf32>
    %126 = vector.broadcast %29 : vector<1x128xf32> to vector<16x128xf32>
    %127 = arith.addf %125, %126 : vector<16x128xf32>
    %c0_58 = arith.constant 0 : index
    %c0_59 = arith.constant 0 : index
    %128 = vector.load %arg10[%c0_58, %c0_59] : memref<16x128xf32, #tpu.memory_space<vmem>>, vector<16x128xf32>
    tpu.vector_store %arg10[%c0_58, %c0_59], %127 {strides = array<i32>} : memref<16x128xf32, #tpu.memory_space<vmem>>, vector<16x128xf32>,
    %c1_i32 = arith.constant 1 : i32
    %129 = arith.cmpi eq, %arg0, %c1_i32 : i32
    %130 = arith.extui %129 : i1 to i32
    %c0_i32_60 = arith.constant 0 : i32
    %131 = arith.cmpi ne, %130, %c0_i32_60 : i32
    scf.if %131 {
      %132 = tpu.iota {dimensions = array<i32: 0>} : vector<2x16xi32>
      %133 = tpu.iota {dimensions = array<i32: 1>} : vector<2x16xi32>
      %c8_i32 = arith.constant 8 : i32
      %134 = vector.broadcast %c8_i32 : i32 to vector<2x16xi32>
      %135 = arith.muli %132, %134 : vector<2x16xi32>
      %136 = arith.cmpi eq, %133, %135 : vector<2x16xi32>
      %137 = arith.extui %136 : vector<2x16xi1> to vector<2x16xi32>
      %138 = arith.sitofp %137 : vector<2x16xi32> to vector<2x16xf32>
      %cst_61 = arith.constant dense<0.000000e+00> : vector<2x128xf32>
      %139 = tpu.matmul %138, %127, %cst_61 {dimension_numbers = #tpu.dot_dimension_numbers<[1], [0], [0], [1], [0, 0, 1, 1], [], []>} : vector<2x16xf32>, vector<16x128xf32>, vector<2x128xf32> -> vector<2x128xf32>
      %c0_62 = arith.constant 0 : index
      %c0_63 = arith.constant 0 : index
      %140 = vector.load %arg6[%c0_62, %c0_63] : memref<128x128xf32, #tpu.memory_space<vmem>>, vector<128x128xf32>
      %cst_64 = arith.constant dense<0.000000e+00> : vector<2x128xf32>
      %141 = tpu.matmul %139, %140, %cst_64 {dimension_numbers = #tpu.dot_dimension_numbers<[1], [0], [0], [1], [0, 0, 1, 1], [], []>} : vector<2x128xf32>, vector<128x128xf32>, vector<2x128xf32> -> vector<2x128xf32>
      %c0_65 = arith.constant 0 : index
      %c256 = arith.constant 256 : index
      %142 = vector.load %arg7[%c0_65, %c256] : memref<1x512xf32, #tpu.memory_space<vmem>>, vector<1x128xf32>
      %143 = vector.broadcast %142 : vector<1x128xf32> to vector<2x128xf32>
      %144 = arith.addf %141, %143 : vector<2x128xf32>
      %c0_66 = arith.constant 0 : index
      %c0_67 = arith.constant 0 : index
      %145 = vector.load %arg8[%c0_66, %c0_67] : memref<2x128xf32, #tpu.memory_space<vmem>>, vector<2x128xf32>
      tpu.vector_store %arg8[%c0_66, %c0_67], %144 {strides = array<i32>} : memref<2x128xf32, #tpu.memory_space<vmem>>, vector<2x128xf32>,
      %c0_68 = arith.constant 0 : index
      %c0_69 = arith.constant 0 : index
      %146 = vector.load %arg9[%c0_68, %c0_69] : memref<2x128xf32, #tpu.memory_space<vmem>>, vector<2x128xf32>
      tpu.vector_store %arg9[%c0_68, %c0_69], %139 {strides = array<i32>} : memref<2x128xf32, #tpu.memory_space<vmem>>, vector<2x128xf32>,
    } else {
    }
    return
  }
  func.func @transform_0(%arg0: i32) -> (i32, i32) {
    %c0_i32 = arith.constant 0 : i32
    %c0_i32_0 = arith.constant 0 : i32
    %c0_i32_1 = arith.constant 0 : i32
    return %c0_i32, %c0_i32_0 : i32, i32
  }
  func.func @transform_1(%arg0: i32) -> (i32, i32) {
    %c0_i32 = arith.constant 0 : i32
    %c0_i32_0 = arith.constant 0 : i32
    %c0_i32_1 = arith.constant 0 : i32
    return %c0_i32, %c0_i32_0 : i32, i32
  }
  func.func @transform_2(%arg0: i32) -> (i32, i32) {
    %c0_i32 = arith.constant 0 : i32
    %c0_i32_0 = arith.constant 0 : i32
    %c0_i32_1 = arith.constant 0 : i32
    return %c0_i32, %c0_i32_0 : i32, i32
  }
  func.func @transform_3(%arg0: i32) -> (i32, i32, i32) {
    %c0_i32 = arith.constant 0 : i32
    %c0_i32_0 = arith.constant 0 : i32
    %c0_i32_1 = arith.constant 0 : i32
    return %arg0, %c0_i32, %c0_i32_0 : i32, i32, i32
  }
  func.func @transform_4(%arg0: i32) -> (i32, i32, i32) {
    %c0_i32 = arith.constant 0 : i32
    %c0_i32_0 = arith.constant 0 : i32
    %c0_i32_1 = arith.constant 0 : i32
    return %arg0, %c0_i32, %c0_i32_0 : i32, i32, i32
  }
  func.func @transform_5(%arg0: i32) -> (i32, i32) {
    %c0_i32 = arith.constant 0 : i32
    %c0_i32_0 = arith.constant 0 : i32
    %c0_i32_1 = arith.constant 0 : i32
    return %c0_i32, %c0_i32_0 : i32, i32
  }
  func.func @transform_6(%arg0: i32) -> (i32, i32) {
    %c0_i32 = arith.constant 0 : i32
    %c0_i32_0 = arith.constant 0 : i32
    %c0_i32_1 = arith.constant 0 : i32
    return %c0_i32, %c0_i32_0 : i32, i32
  }
  func.func @transform_7(%arg0: i32) -> (i32, i32) {
    %c0_i32 = arith.constant 0 : i32
    %c0_i32_0 = arith.constant 0 : i32
    %c0_i32_1 = arith.constant 0 : i32
    return %c0_i32, %c0_i32_0 : i32, i32
  }
  func.func @transform_8(%arg0: i32) -> (i32, i32) {
    %c0_i32 = arith.constant 0 : i32
    %c0_i32_0 = arith.constant 0 : i32
    %c0_i32_1 = arith.constant 0 : i32
    return %c0_i32, %c0_i32_0 : i32, i32
  }
}

</mosaic_0001>

<bundles_post_ra>
// kernel: classifier_forward.1
= control target key start
LH: loop header
LB: loop body
LE: loop exit
PB: predicated region body
PF: predicated region fallthrough
CT: control target
= control target key end

     0   :  { %14 = vsyncpa [#allocation4], 0  ;;  %s2768_s0 = inlined_call_operand.vmem [shape: f32[16,128], index: 0, kind: input, shape index: {}]   ;;  %s2769_s1 = inlined_call_operand.vmem [shape: f32[64,16], index: 1, kind: input, shape index: {}]   ;;  %s2770_s2 = inlined_call_operand.vmem [shape: f32[64,128], index: 2, kind: input, shape index: {}]   ;;  %s2771_s3 = inlined_call_operand.hbm [shape: f32[2,128,768], index: 3, kind: input, shape index: {}]   ;;  %s2772_s4 = inlined_call_operand.vmem [shape: f32[2,1,1280], index: 4, kind: input, shape index: {}]   ;;  %s2773_s5 = inlined_call_operand.vmem [shape: f32[128,128], index: 5, kind: input, shape index: {}]   ;;  %s2774_s6 = inlined_call_operand.vmem [shape: f32[1,512], index: 6, kind: input, shape index: {}]   ;;  %s2775_s7 = inlined_call_operand.hbm [shape: f32[2,128], index: 7, kind: output, shape index: {0}]   ;;  %s2776_s8 = inlined_call_operand.hbm [shape: f32[2,128], index: 8, kind: output, shape index: {1}]  }
   0x1   :  { %16 = vsyncpa [#allocation4 + $0x1], 0 }
   0x2   :  { %17 = vsyncpa [#allocation5], 0 }
   0x3   :  { %18 = vsyncpa [#allocation8], 0  ;;  %s2286_s27 = smov 0   ;;  %s2288_s28 = smov 0  }
   0x4   :  { %s2290_s29 = smov 0   ;;  %s2292_s30 = smov 0  }
   0x5 LB: > { %s2305_s9 = sadd.s32 4294967295, %s2231_s30   ;;  %s2308_s10 = sadd.s32 1, %s2231_s30   ;;  %s2231_s30 = sphi %s2292_s30, %s2785_s30   ;;  %s2227_s29 = sphi %s2290_s29, %s2784_s29   ;;  %s2223_s28 = sphi %s2288_s28, %s2783_s28   ;;  %s2219_s27 = sphi %s2286_s27, %s2782_s27  }
   0x6   : > { %s91_s11 = ssub.s32 %s2231_s30, %s2308_s10  ;;  %s94_s12 = sadd.s32 1, %s2227_s29 }
   0x7   : > { %p92_p0 = scmp.eq.s32.totalorder %s91_s11, 0  ;;  %p101_p1 = scmp.ne.s32.totalorder %s2227_s29, %s2223_s28 }
   0x8   : > { %p102_p2 = scmp.eq.s32.totalorder %s2231_s30, 0  ;;  %p107_p3 = scmp.ne.s32.totalorder %s2223_s28, %s2219_s27 }
   0x9   : > { %s2318_s13 = scalar_select %p92_p0, %s2227_s29, %s94_s12  }
   0xa   : > { %p103_p4 = por %p102_p2, %p101_p1  ;;  %p108_p5 = scmp.eq.s32.totalorder %s2305_s9, 0 }
   0xb   : > { %p2021_p6 = scmp.lt.s32.totalorder %s2231_s30, 2  ;;  %s256_s15 = sand.u32 1, %s2227_s29  }
   0xc   : > { %p2322_p7 = por %p108_p5, %p107_p3  ;;  %s2003_s16 = smul.u32 768, %s256_s15 }
   0xd   : > { %s2004_s17 = smul.u32 12288, %s2231_s30  ;;  %p2328_p8 = pnand %p2021_p6, %p103_p4 }
   0xe   : > { %s2778_s14 = scalar_select %p2322_p7, 1, 0 }
   0xf   : > { %s2335_s21 = scalar_lea.hbm %s2771_s3, %s2004_s17  ;;  %s260_s22 = scalar_lea.vmem [#allocation3], %s2003_s16 }
  0x10   : > { %s267_s23 = sshll.u32 %s260_s22, 4  ;;  %s2340_s24 = scalar_lea.sflag [#allocation4], %s256_s15  ;;  %s2337_s23 = int_to_ptr.vmem [resolvable:$true] %s267_s23 }
  0x11   : > { %s2113_s25 = scalar_lea.hbm %s2335_s21, 12288  ;;  %p2115_p11 = pneg %p2328_p8 }
  0x12   : > { %p2114_p10 = scmp.ne.s32.totalorder %s2335_s21, %s2113_s25  ;;  %s2118_s11 = scalar_lea.hbm %s2771_s3, 24576 }
  0x13   : > { %p2119_p0 = scmp.lt.s32.totalorder %s2335_s21, %s2771_s3  ;;  %p2120_p1 = scmp.lt.s32.totalorder %s2118_s11, %s2113_s25 }
  0x14   : > { %p2116_p12 = pnand %p2115_p11, %p2114_p10 }
  0x15   : > { %p2121_p2 = por %p2120_p1, %p2119_p0 }
  0x16   : > { %p2117_p13 = pneg %p2116_p12 }
  0x18   : > { %p2122_p3 = pnand %p2121_p2, %p2117_p13 }
  0x1a   : > { %2125 = shalt.err (!%p2122_p3)
}
  0x1b   : > { %s2126_s15 = scalar_lea.vmem %s2337_s23, 12288  ;;  %s2233_s16 = smov [#allocation3]  }
  0x1c   : > { %p2127_p4 = scmp.ne.s32.totalorder %s2337_s23, %s2126_s15  ;;  %s2131_s19 = sshll.u32 %s2233_s16, 4  ;;  %s2132_s19 = int_to_ptr.vmem [resolvable:$false] %s2131_s19 }
  0x1d   : > { %s2133_s20 = scalar_lea.vmem %s2132_s19, 24576  ;;  %p2134_p10 = scmp.lt.s32.totalorder %s2337_s23, %s2132_s19 }
  0x1e   : > { %p2129_p5 = pnand %p2127_p4, %p2115_p11  ;;  %p2135_p12 = scmp.lt.s32.totalorder %s2133_s20, %s2126_s15 }
  0x20   : > { %p2130_p6 = pneg %p2129_p5  ;;  %p2136_p9 = por %p2135_p12, %p2134_p10 }
  0x22   : > { %p2137_p7 = pnand %p2136_p9, %p2130_p6 }
  0x24   : > { %2140 = shalt.err (!%p2137_p7)
}
  0x25   : > { %s2234_s22 = smov 768   ;;  %s2235_s25 = smov 48  }
  0x26   : > { %2020 = dma.hbm_to_vmem [thread:$0]  (!%p2328_p8), %s2335_s21, 12288, %s2337_s23, %s2340_s24, %s2234_s22, %s2234_s22, %s2235_s25  }
  0x27   : > { %p282_p11 = scmp.lt.s32.totalorder %s2231_s30, 3  ;;  %p2780_p13 = scmp.ge.s32.totalorder %s2231_s30, 1 }
  0x29   : > { %p283_p0 = pnand %p2780_p13, %p282_p11 }
  0x2a   : > { %s288_s26 = sand.u32 (!%p283_p0), 1, %s2223_s28   ;;  %p2781_p7 = scmp.ne.s32.totalorder (!%p283_p0), %s2778_s14, 0 }
  0x2b   : > { %286 = sbr.rel (%p283_p0) target bundleno = 3005 (0xbbd), region = 48  ;;  %s289_s11 = scalar_lea.sflag (!%p283_p0), [#allocation4], %s288_s26 }
  0x2c   : > { %s2005_s27 = smul.u32 (!%p283_p0), 768, %s288_s26 }
  0x2e   : > { %s2365_s12 = scalar_lea.vmem (!%p283_p0), [#allocation3], %s2005_s27 }
  0x30   : > { %2206 = dma.done.wait (%p2781_p7), %s289_s11, 12288  }
  0x31   : > { %2208 = vsyncadd (%p2781_p7), %s289_s11, 4294955008  ;;  %p324_p9 = scmp.lt.s32.totalorder %s2305_s9, 1  ;;  %v2381_v0 = vld [vmem:[%s2774_s6 + $0x3] sm:$0x1]  ;;  %p1649_p8 = scmp.ne.s32.totalorder %s2305_s9, 0 }
  0x33   : > { %s325_s18 = scalar_select %p324_p9, %s2305_s9, 1 }
  0x34   : > { %332 = sbr.rel (%p1649_p8) target bundleno = 371 (0x173), region = 56 }
  0x35   : > { %s2006_s21 = smul.u32 10, %s325_s18 }
  0x37   : > { %s2376_s24 = scalar_lea.vmem %s2772_s4, %s2006_s21 }
  0x39   : > { %v333_v1 = vld [vmem:[%s2768_s0] sm:$0xff]  ;;  %v334_v2 = vld [vmem:[%s2768_s0 + $0x8] sm:$0xff]  ;;  %v346_v3 = vlaneseq }
  0x3a   : > { %337 = vadd.xlane.f32.xlu0 %v333_v1  ;;  %v1650_v24 = vld [vmem:[%s2774_s6] ss:$0 sm:$0xff]  ;;  %v1651_v26 = vld [vmem:[%s2774_s6 + $0x1] ss:$0 sm:$0xff] }
  0x3b   : > { %v347_v4 = vshrl.u32 %v346_v3, 7 }
  0x3d   : > { %v348_v5 = vsub.s32 0, %v347_v4 }
  0x3e   : > { %339 = vadd.xlane.f32.xlu0 %v334_v2 }
  0x3f   : > { %v349_v8 = vrot.slane %v2381_v0, %v348_v5 }
  0xc3   : > { %v338_v6 = vpop.xlane.xlu0 %337 }
  0xc4   : > { %v341_v7 = vmul.f32 0.03125, %v338_v6 }
  0xc6   : > { %v343_v9 = vsub.f32 %v333_v1, %v341_v7 }
  0xc7   : > { %v340_v10 = vpop.xlane.xlu0 %339 }
  0xc8   : > { %v342_v11 = vmul.f32 0.03125, %v340_v10  ;;  %v351_v12 = vmul.f32 %v349_v8, %v343_v9 }
  0xca   : > { %v344_v13 = vsub.f32 %v334_v2, %v342_v11  ;;  %v353_v14 = vmul.f32 %v351_v12, %v351_v12 }
  0xcc   : > { %355 = vadd.xlane.f32.xlu1 %v353_v14  ;;  %v352_v15 = vmul.f32 %v349_v8, %v344_v13 }
  0xce   : > { %v354_v16 = vmul.f32 %v352_v15, %v352_v15 }
  0xd0   : > { %357 = vadd.xlane.f32.xlu1 %v354_v16 }
 0x155   : > { %v356_v17 = vpop.xlane.xlu1 %355 }
 0x156   : > { %v359_v18 = vmul.f32 0.03125, %v356_v17 }
 0x158   : > { %v361_v19 = vadd.f32 1e-12, %v359_v18 }
 0x159   : > { %v358_v20 = vpop.xlane.xlu1 %357 }
 0x15a   : > { %2065 = vrsqrt.f32 %v361_v19  ;;  %v360_v21 = vmul.f32 0.03125, %v358_v20 }
 0x15c   : > { %v362_v22 = vadd.f32 1e-12, %v360_v21 }
 0x15e   : > { %2067 = vrsqrt.f32 %v362_v22 }
 0x167   : > { %v2066_v23 = vpop.eup %2065 }
 0x168   : > { %v365_v25 = vmul.f32 %v2066_v23, %v351_v12 }
 0x16a   : > { %v373_v27 = vmul.f32 %v1650_v24, %v365_v25 }
 0x16b   : > { %v2068_v28 = vpop.eup %2067 }
 0x16c   : > { %v381_v29 = vadd.f32 %v1651_v26, %v373_v27  ;;  %v366_v30 = vmul.f32 %v2068_v28, %v352_v15 }
 0x16e   : > { %383 = vst [vmem:[#allocation2] sm:$0xff] %v381_v29  ;;  %v374_v31 = vmul.f32 %v1650_v24, %v366_v30 }
 0x170   : > { %v382_v32 = vadd.f32 %v1651_v26, %v374_v31 }
 0x172   : > { %384 = vst [vmem:[#allocation2 + $0x8] sm:$0xff] %v382_v32 }
 0x173 PF: > { %v441_v33 = vld [vmem:[%s2365_s12 + $0x2d8] sm:$0xff]  ;;  %v440_v34 = vld [vmem:[%s2365_s12 + $0x2d0] sm:$0xff]  ;;  %v438_v35 = vld [vmem:[%s2365_s12 + $0x2a8] sm:$0xff]  ;;  %v2236_v37 = vmov 0.0   ;;  %v500_v5 = vlaneseq  ;;  %vm788_vm0 = vcmask 130048   ;;  %p1667_p1 = scmp.ne.s32.totalorder %s2305_s9, 1 }
 0x174   : > { %515 = vmatprep.subr.mxu0 %v441_v33  ;;  %v437_v36 = vld [vmem:[%s2365_s12 + $0x2a0] sm:$0xff]  ;;  %579 = vmatprep.mubr.f32.mxu0 %v2236_v37  ;;  %v435_v38 = vld [vmem:[%s2365_s12 + $0x278] sm:$0xff]  ;;  %v434_v39 = vld [vmem:[%s2365_s12 + $0x270] sm:$0xff] }
 0x175   : > { %516 = vmatpush1.msra.mxu0 %v440_v34  ;;  %v432_v40 = vld [vmem:[%s2365_s12 + $0x248] sm:$0xff]  ;;  %v431_v41 = vld [vmem:[%s2365_s12 + $0x240] sm:$0xff]  ;;  %v429_v42 = vld [vmem:[%s2365_s12 + $0x218] sm:$0xff]  ;;  %v2439_v6 = vshrl.u32 %v500_v5, 7 }
 0x176   : > { %517 = vmatprep.subr.mxu0 %v438_v35  ;;  %v428_v43 = vld [vmem:[%s2365_s12 + $0x210] sm:$0xff]  ;;  %v426_v44 = vld [vmem:[%s2365_s12 + $0x1e8] sm:$0xff]  ;;  %v425_v45 = vld [vmem:[%s2365_s12 + $0x1e0] sm:$0xff] }
 0x177   : > { %518 = vmatpush1.msra.mxu0 %v437_v36  ;;  %v423_v46 = vld [vmem:[%s2365_s12 + $0x1b8] sm:$0xff]  ;;  %v2411_v47 = vld [vmem:[#allocation2] sm:$0xff]  ;;  %v420_v49 = vld [vmem:[%s2365_s12 + $0x188] sm:$0xff]  ;;  %v502_v7 = vsub.s32 0, %v2439_v6  ;;  %v506_v13 = vsub.s32 1, %v2439_v6 }
 0x178   : > { %519 = vmatprep.subr.mxu0 %v435_v38  ;;  %v422_v48 = vld [vmem:[%s2365_s12 + $0x1b0] sm:$0xff]  ;;  %1821 = vmatprep.mubr.f32.mxu1 %v2411_v47  ;;  %v419_v50 = vld [vmem:[%s2365_s12 + $0x180] sm:$0xff]  ;;  %v417_v51 = vld [vmem:[%s2365_s12 + $0x158] sm:$0xff] }
 0x179   : > { %520 = vmatpush1.msra.mxu0 %v434_v39  ;;  %v416_v52 = vld [vmem:[%s2365_s12 + $0x150] sm:$0xff]  ;;  %v414_v53 = vld [vmem:[%s2365_s12 + $0x128] sm:$0xff]  ;;  %v413_v54 = vld [vmem:[%s2365_s12 + $0x120] sm:$0xff] }
 0x17a   : > { %521 = vmatprep.subr.mxu0 %v432_v40  ;;  %v411_v55 = vld [vmem:[%s2365_s12 + $0xf8] sm:$0xff]  ;;  %v410_v56 = vld [vmem:[%s2365_s12 + $0xf0] sm:$0xff]  ;;  %v408_v57 = vld [vmem:[%s2365_s12 + $0xc8] sm:$0xff] }
 0x17b   : > { %522 = vmatpush1.msra.mxu0 %v431_v41  ;;  %v407_v58 = vld [vmem:[%s2365_s12 + $0xc0] sm:$0xff]  ;;  %v405_v59 = vld [vmem:[%s2365_s12 + $0x98] sm:$0xff]  ;;  %v404_v60 = vld [vmem:[%s2365_s12 + $0x90] sm:$0xff] }
 0x17c   : > { %523 = vmatprep.subr.mxu0 %v429_v42  ;;  %v402_v61 = vld [vmem:[%s2365_s12 + $0x68] sm:$0xff]  ;;  %v401_v62 = vld [vmem:[%s2365_s12 + $0x60] sm:$0xff]  ;;  %v399_v63 = vld [vmem:[%s2365_s12 + $0x38] sm:$0xff] }
 0x17d   : > { %524 = vmatpush1.msra.mxu0 %v428_v43  ;;  %v398_v1 = vld [vmem:[%s2365_s12 + $0x30] sm:$0xff]  ;;  %v396_v2 = vld [vmem:[%s2365_s12 + $0x8] sm:$0xff]  ;;  %v395_v3 = vld [vmem:[%s2365_s12] sm:$0xff] }
 0x17e   : > { %525 = vmatprep.subr.mxu0 %v426_v44  ;;  %v2435_v4 = vld [vmem:[#allocation2 + $0x8] sm:$0xff]  ;;  %v2443_v8 = vld [vmem:[%s2376_s24] sm:$0x7]  ;;  %v2464_v23 = vld [vmem:[%s2770_s2 + $0x10] sm:$0xff] }
 0x17f   : > { %526 = vmatpush1.msra.mxu0 %v425_v45  ;;  %v503_v9 = vrot.slane %v2443_v8, %v502_v7  ;;  %v2451_v11 = vld [vmem:[%s2770_s2] sm:$0xff]  ;;  %v507_v17 = vrot.slane %v2443_v8, %v506_v13  ;;  %v2459_v22 = vld [vmem:[%s2770_s2 + $0x8] sm:$0xff]  ;;  %v2471_v26 = vld [vmem:[%s2770_s2 + $0x18] sm:$0xff] }
 0x180   : > { %527 = vmatprep.subr.mxu0 %v423_v46  ;;  %v2476_v27 = vld [vmem:[%s2770_s2 + $0x20] sm:$0xff]  ;;  %v2483_v30 = vld [vmem:[%s2770_s2 + $0x28] sm:$0xff]  ;;  %v2488_v31 = vld [vmem:[%s2770_s2 + $0x30] sm:$0xff] }
 0x181   : > { %528 = vmatpush1.msra.mxu0 %v422_v48  ;;  %v2495_v34 = vld [vmem:[%s2770_s2 + $0x38] sm:$0xff]  ;;  %v442_v36 = vld [vmem:[%s2365_s12 + $0x2e0] sm:$0xff]  ;;  %v433_v39 = vld [vmem:[%s2365_s12 + $0x250] sm:$0xff] }
 0x182   : > { %529 = vmatprep.subr.mxu0 %v420_v49  ;;  %1789 = vmatprep.subr.mxu1 %v442_v36  ;;  %v436_v38 = vld [vmem:[%s2365_s12 + $0x280] sm:$0xff]  ;;  %v427_v41 = vld [vmem:[%s2365_s12 + $0x1f0] sm:$0xff]  ;;  %v680_v13 = vld [vmem:[%s2769_s1 + $0x28] sm:$0xff] }
 0x183   : > { %530 = vmatpush1.msra.mxu0 %v419_v50  ;;  %1790 = vmatpush3.msra.mxu1 %v442_v36  ;;  %v430_v40 = vld [vmem:[%s2365_s12 + $0x220] sm:$0xff]  ;;  %v421_v43 = vld [vmem:[%s2365_s12 + $0x190] sm:$0xff] }
 0x184   : > { %531 = vmatprep.subr.mxu0 %v417_v51  ;;  %v424_v42 = vld [vmem:[%s2365_s12 + $0x1c0] sm:$0xff]  ;;  %v415_v45 = vld [vmem:[%s2365_s12 + $0x130] sm:$0xff] }
 0x185   : > { %532 = vmatpush1.msra.mxu0 %v416_v52  ;;  %v418_v44 = vld [vmem:[%s2365_s12 + $0x160] sm:$0xff]  ;;  %v409_v48 = vld [vmem:[%s2365_s12 + $0xd0] sm:$0xff] }
 0x186   : > { %533 = vmatprep.subr.mxu0 %v414_v53  ;;  %v412_v46 = vld [vmem:[%s2365_s12 + $0x100] sm:$0xff]  ;;  %v403_v50 = vld [vmem:[%s2365_s12 + $0x70] sm:$0xff] }
 0x187   : > { %534 = vmatpush1.msra.mxu0 %v413_v54  ;;  %v406_v49 = vld [vmem:[%s2365_s12 + $0xa0] sm:$0xff]  ;;  %v397_v52 = vld [vmem:[%s2365_s12 + $0x10] sm:$0xff] }
 0x188   : > { %535 = vmatprep.subr.mxu0 %v411_v55  ;;  %v400_v51 = vld [vmem:[%s2365_s12 + $0x40] sm:$0xff]  ;;  %v675_v54 = vld [vmem:[%s2769_s1] sm:$0xff]  ;;  %v676_v55 = vld [vmem:[%s2769_s1 + $0x8] sm:$0xff] }
 0x189   : > { %536 = vmatpush1.msra.mxu0 %v410_v56 }
 0x18a   : > { %537 = vmatprep.subr.mxu0 %v408_v57 }
 0x18b   : > { %538 = vmatpush1.msra.mxu0 %v407_v58 }
 0x18c   : > { %539 = vmatprep.subr.mxu0 %v405_v59  ;;  %v677_v59 = vld [vmem:[%s2769_s1 + $0x10] sm:$0xff] }
 0x18d   : > { %540 = vmatpush1.msra.mxu0 %v404_v60 }
 0x18e   : > { %541 = vmatprep.subr.mxu0 %v402_v61 }
 0x18f   : > { %542 = vmatpush1.msra.mxu0 %v401_v62  ;;  %v678_v62 = vld [vmem:[%s2769_s1 + $0x18] sm:$0xff] }
 0x190   : > { %543 = vmatprep.subr.mxu0 %v399_v63 }
 0x191   : > { %544 = vmatpush1.msra.mxu0 %v398_v1 }
 0x192   : > { %545 = vmatprep.subr.mxu0 %v396_v2 }
 0x193   : > { %546 = vmatpush1.msra.mxu0 %v395_v3  ;;  %v679_v3 = vld [vmem:[%s2769_s1 + $0x20] sm:$0xff] }
 0x194   : > { %580 = vmatmul.mubr.f32.vlgmr.msra.gmra.mxu0 %v2411_v47 }
 0x195   : > { %585 = vmatprep.mubr.f32.mxu0 %v2236_v37  ;;  %v439_v37 = vld [vmem:[%s2365_s12 + $0x2b0] sm:$0xff] }
 0x196   : > { %1791 = vmatprep.subr.mxu1 %v439_v37 }
 0x197   : > { %1792 = vmatpush3.msra.mxu1 %v439_v37 }
 0x198   : > { %586 = vmatmul.mubr.f32.gmra.mxu0 %v2435_v4  ;;  %1793 = vmatprep.subr.mxu1 %v436_v38 }
 0x199   : > { %1794 = vmatpush3.msra.mxu1 %v436_v38 }
 0x19a   : > { %1795 = vmatprep.subr.mxu1 %v433_v39 }
 0x19b   : > { %1796 = vmatpush3.msra.mxu1 %v433_v39 }
 0x19c   : > { %1797 = vmatprep.subr.mxu1 %v430_v40 }
 0x19d   : > { %1798 = vmatpush3.msra.mxu1 %v430_v40 }
 0x19e   : > { %1799 = vmatprep.subr.mxu1 %v427_v41 }
 0x19f   : > { %1800 = vmatpush3.msra.mxu1 %v427_v41 }
 0x1a0   : > { %1801 = vmatprep.subr.mxu1 %v424_v42 }
 0x1a1   : > { %1802 = vmatpush3.msra.mxu1 %v424_v42 }
 0x1a2   : > { %1803 = vmatprep.subr.mxu1 %v421_v43 }
 0x1a3   : > { %1804 = vmatpush3.msra.mxu1 %v421_v43 }
 0x1a4   : > { %1805 = vmatprep.subr.mxu1 %v418_v44 }
 0x1a5   : > { %1806 = vmatpush3.msra.mxu1 %v418_v44 }
 0x1a6   : > { %1807 = vmatprep.subr.mxu1 %v415_v45 }
 0x1a7   : > { %1808 = vmatpush3.msra.mxu1 %v415_v45 }
 0x1a8   : > { %1809 = vmatprep.subr.mxu1 %v412_v46 }
 0x1a9   : > { %1810 = vmatpush3.msra.mxu1 %v412_v46 }
 0x1aa   : > { %1811 = vmatprep.subr.mxu1 %v409_v48 }
 0x1ab   : > { %1812 = vmatpush3.msra.mxu1 %v409_v48 }
 0x1ac   : > { %1813 = vmatprep.subr.mxu1 %v406_v49 }
 0x1ad   : > { %1814 = vmatpush3.msra.mxu1 %v406_v49 }
 0x1ae   : > { %1815 = vmatprep.subr.mxu1 %v403_v50 }
 0x1af   : > { %1816 = vmatpush3.msra.mxu1 %v403_v50 }
 0x1b0   : > { %1817 = vmatprep.subr.mxu1 %v400_v51 }
 0x1b1   : > { %1818 = vmatpush3.msra.mxu1 %v400_v51 }
 0x1b2   : > { %1819 = vmatprep.subr.mxu1 %v397_v52 }
 0x1b3   : > { %1820 = vmatpush3.msra.mxu1 %v397_v52 }
 0x1b4   : > { %1822 = vmatmul.mubr.f32.vlgmr.msra.gmra.mxu1 %v2435_v4 }
 0x254   : > { %v581_v10 = vpop.f32.mrf.mxu0 }
 0x255   : > { %v582_v12 = vadd.f32 %v581_v10, %v503_v9 }
 0x256   : > { %v583_v14 = vpop.f32.mrf.mxu0 }
 0x257   : > { %v667_v15 = vmul.f32 %v582_v12, %v2451_v11  ;;  %v584_v20 = vadd.f32 %v583_v14, %v507_v17  ;;  %v669_v25 = vmul.f32 %v582_v12, %v2464_v23  ;;  %v671_v29 = vmul.f32 %v582_v12, %v2476_v27 }
 0x258   : > { %v587_v16 = vpop.f32.mrf.mxu0  ;;  %v673_v33 = vmul.f32 %v582_v12, %v2488_v31 }
 0x259   : > { %1828 = vmatprep.mubr.f32.mxu0 %v667_v15  ;;  %v588_v21 = vadd.f32 %v587_v16, %v503_v9 }
 0x25a   : > { %v589_v18 = vpop.f32.mrf.mxu0 }
 0x25b   : > { %v590_v19 = vadd.f32 %v589_v18, %v507_v17  ;;  %v668_v24 = vmul.f32 %v588_v21, %v2459_v22  ;;  %v670_v28 = vmul.f32 %v588_v21, %v2471_v26  ;;  %v672_v32 = vmul.f32 %v588_v21, %v2483_v30  ;;  %v681_v17 = vld [vmem:[%s2769_s1 + $0x30] sm:$0xff] }
 0x25c   : > { %v674_v35 = vmul.f32 %v588_v21, %v2495_v34  ;;  %v682_v21 = vld [vmem:[%s2769_s1 + $0x38] sm:$0xff] }
 0x25d   : > { %1824 = vmatprep.subr.mxu0 %v590_v19 }
 0x25e   : > { %1825 = vmatpush3.xpose.msra.mxu0 %v590_v19 }
 0x25f   : > { %1826 = vmatprep.subr.mxu0 %v584_v20 }
 0x262   : > { %1827 = vmatpush3.xpose.msra.mxu0 %v584_v20 }
 0x265   : > { %1829 = vmatmul.mubr.f32.vlgmr.msra.gmra.mxu0 %v668_v24 }
 0x266   : > { %1831 = vmatprep.mubr.f32.mxu0 %v669_v25 }
 0x269   : > { %1832 = vmatmul.mubr.f32.gmra.mxu0 %v670_v28 }
 0x26a   : > { %1834 = vmatprep.mubr.f32.mxu0 %v671_v29 }
 0x26d   : > { %1835 = vmatmul.mubr.f32.gmra.mxu0 %v672_v32 }
 0x26e   : > { %1837 = vmatprep.mubr.f32.mxu0 %v673_v33 }
 0x271   : > { %1838 = vmatmul.mubr.f32.gmra.mxu0 %v674_v35  ;;  %v510_v35 = vsub.s32 2, %v2439_v6 }
 0x273   : > { %v511_v36 = vrot.slane %v2443_v8, %v510_v35  ;;  %v454_v35 = vld [vmem:[%s2365_s12 + $0x228] sm:$0xff] }
 0x274   : > { %v1823_v37 = vpop.f32.mrf.mxu1 }
 0x275   : > { %v664_v38 = vadd.f32 %v1823_v37, %v511_v36 }
 0x277   : > { %1840 = vmatprep.subr.mxu0 %v664_v38 }
 0x278   : > { %1841 = vmatpush3.msra.mxu0 %v664_v38 }
 0x325   : > { %v1830_v53 = vpop.f32.mrf.mxu0 }
 0x326   : > { %v755_v60 = vadd.f32 %v1830_v53, %v676_v55 }
 0x327   : > { %v749_v56 = vpop.f32.mrf.mxu0 }
 0x328   : > { %v750_v57 = vadd.f32 %v749_v56, %v675_v54  ;;  %v792_v12 = vsel %vm788_vm0, %v755_v60, -inf }
 0x329   : > { %v1833_v58 = vpop.f32.mrf.mxu0 }
 0x32a   : > { %v789_v61 = vsel %vm788_vm0, %v750_v57, -inf  ;;  %v765_v9 = vadd.f32 %v1833_v58, %v678_v62 }
 0x32b   : > { %v759_v63 = vpop.f32.mrf.mxu0  ;;  %790 = vmax.xlane.f32.xlu0 %v789_v61 }
 0x32c   : > { %v760_v1 = vadd.f32 %v759_v63, %v677_v59  ;;  %v798_v19 = vsel %vm788_vm0, %v765_v9, -inf }
 0x32d   : > { %v1836_v2 = vpop.f32.mrf.mxu0 }
 0x32e   : > { %v795_v10 = vsel %vm788_vm0, %v760_v1, -inf  ;;  %v775_v18 = vadd.f32 %v1836_v2, %v680_v13 }
 0x32f   : > { %v769_v14 = vpop.f32.mrf.mxu0  ;;  %796 = vmax.xlane.f32.xlu1 %v795_v10  ;;  %793 = vmax.xlane.f32.xlu0 %v792_v12 }
 0x330   : > { %v770_v15 = vadd.f32 %v769_v14, %v679_v3  ;;  %v804_v29 = vsel %vm788_vm0, %v775_v18, -inf }
 0x331   : > { %v1839_v16 = vpop.f32.mrf.mxu0 }
 0x332   : > { %v801_v20 = vsel %vm788_vm0, %v770_v15, -inf  ;;  %v785_v28 = vadd.f32 %v1839_v16, %v682_v21 }
 0x333   : > { %v779_v24 = vpop.f32.mrf.mxu0  ;;  %799 = vmax.xlane.f32.xlu1 %v798_v19  ;;  %802 = vmax.xlane.f32.xlu0 %v801_v20 }
 0x334   : > { %v780_v25 = vadd.f32 %v779_v24, %v681_v17  ;;  %v810_v33 = vsel %vm788_vm0, %v785_v28, -inf  ;;  %v658_v17 = vpop.f32.mrf.mxu1 }
 0x335   : > { %v659_v20 = vadd.f32 %v658_v17, %v511_v36  ;;  %v453_v36 = vld [vmem:[%s2365_s12 + $0x1f8] sm:$0xff] }
 0x336   : > { %v807_v32 = vsel %vm788_vm0, %v780_v25, -inf }
 0x337   : > { %805 = vmax.xlane.f32.xlu1 %v804_v29  ;;  %808 = vmax.xlane.f32.xlu0 %v807_v32  ;;  %v457_v29 = vld [vmem:[%s2365_s12 + $0x2b8] sm:$0xff]  ;;  %v456_v32 = vld [vmem:[%s2365_s12 + $0x288] sm:$0xff] }
 0x338   : > { %1842 = vmatprep.subr.mxu0 %v659_v20 }
 0x339   : > { %1843 = vmatpush3.msra.mxu0 %v659_v20 }
 0x33b   : > { %811 = vmax.xlane.f32.xlu1 %v810_v33  ;;  %v455_v33 = vld [vmem:[%s2365_s12 + $0x258] sm:$0xff] }
 0x3b4   : > { %v791_v39 = vpop.xlane.xlu0 %790 }
 0x3b5   : > { %v813_v40 = vsub.f32 %v750_v57, %v791_v39 }
 0x3b7   : > { %v821_v41 = vmul.f32 1.442695, %v813_v40 }
 0x3b8   : > { %v797_v42 = vpop.xlane.xlu1 %796  ;;  %v794_v43 = vpop.xlane.xlu0 %793 }
 0x3b9   : > { %2069 = vpow2.f32 %v821_v41  ;;  %v815_v44 = vsub.f32 %v760_v1, %v797_v42  ;;  %v814_v45 = vsub.f32 %v755_v60, %v794_v43 }
 0x3bb   : > { %v825_v46 = vmul.f32 1.442695, %v815_v44  ;;  %v823_v48 = vmul.f32 1.442695, %v814_v45 }
 0x3bc   : > { %v800_v49 = vpop.xlane.xlu1 %799  ;;  %v803_v50 = vpop.xlane.xlu0 %802 }
 0x3bd   : > { %2071 = vpow2.f32 %v825_v46  ;;  %v816_v51 = vsub.f32 %v765_v9, %v800_v49  ;;  %v817_v52 = vsub.f32 %v770_v15, %v803_v50 }
 0x3be   : > { %2073 = vpow2.f32 %v823_v48 }
 0x3bf   : > { %v827_v8 = vmul.f32 1.442695, %v816_v51  ;;  %v829_v53 = vmul.f32 1.442695, %v817_v52 }
 0x3c0   : > { %v806_v54 = vpop.xlane.xlu1 %805  ;;  %v809_v55 = vpop.xlane.xlu0 %808 }
 0x3c1   : > { %2075 = vpow2.f32 %v827_v8  ;;  %v818_v56 = vsub.f32 %v775_v18, %v806_v54  ;;  %v819_v57 = vsub.f32 %v780_v25, %v809_v55 }
 0x3c2   : > { %2077 = vpow2.f32 %v829_v53 }
 0x3c3   : > { %v831_v58 = vmul.f32 1.442695, %v818_v56  ;;  %v833_v59 = vmul.f32 1.442695, %v819_v57 }
 0x3c4   : > { %v812_v61 = vpop.xlane.xlu1 %811 }
 0x3c5   : > { %2079 = vpow2.f32 %v831_v58  ;;  %v820_v60 = vsub.f32 %v785_v28, %v812_v61  ;;  %v458_v28 = vld [vmem:[%s2365_s12 + $0x2e8] sm:$0xff] }
 0x3c6   : > { %v2549_v62 = vpop.eup %2069  ;;  %2081 = vpow2.f32 %v833_v59  ;;  %1856 = vmatprep.subr.mxu1 %v458_v28 }
 0x3c7   : > { %v835_v63 = vmul.f32 1.442695, %v820_v60  ;;  %v837_v1 = vsel %vm788_vm0, %v2549_v62, 0.0  ;;  %1857 = vmatpush3.msra.mxu1 %v458_v28  ;;  %v452_v60 = vld [vmem:[%s2365_s12 + $0x1c8] sm:$0xff] }
 0x3c8   : > { %838 = vadd.xlane.f32.xlu0 %v837_v1  ;;  %1858 = vmatprep.subr.mxu1 %v457_v29  ;;  %v449_v1 = vld [vmem:[%s2365_s12 + $0x138] sm:$0xff] }
 0x3c9   : > { %2083 = vpow2.f32 %v835_v63  ;;  %1859 = vmatpush3.msra.mxu1 %v457_v29  ;;  %v450_v63 = vld [vmem:[%s2365_s12 + $0x168] sm:$0xff] }
 0x3ca   : > { %v2553_v2 = vpop.eup %2071  ;;  %1860 = vmatprep.subr.mxu1 %v456_v32 }
 0x3cb   : > { %v2555_v3 = vpop.eup %2073  ;;  %v843_v9 = vsel %vm788_vm0, %v2553_v2, 0.0  ;;  %1861 = vmatpush3.msra.mxu1 %v456_v32 }
 0x3cc   : > { %844 = vadd.xlane.f32.xlu0 %v843_v9  ;;  %v840_v10 = vsel %vm788_vm0, %v2555_v3, 0.0  ;;  %1862 = vmatprep.subr.mxu1 %v455_v33  ;;  %v446_v9 = vld [vmem:[%s2365_s12 + $0xa8] sm:$0xff] }
 0x3cd   : > { %841 = vadd.xlane.f32.xlu1 %v840_v10  ;;  %1863 = vmatpush3.msra.mxu1 %v455_v33  ;;  %v445_v10 = vld [vmem:[%s2365_s12 + $0x78] sm:$0xff] }
 0x3ce   : > { %v2561_v12 = vpop.eup %2075  ;;  %1864 = vmatprep.subr.mxu1 %v454_v35 }
 0x3cf   : > { %v2563_v13 = vpop.eup %2077  ;;  %v846_v14 = vsel %vm788_vm0, %v2561_v12, 0.0  ;;  %1865 = vmatpush3.msra.mxu1 %v454_v35 }
 0x3d0   : > { %v849_v15 = vsel %vm788_vm0, %v2563_v13, 0.0  ;;  %1866 = vmatprep.subr.mxu1 %v453_v36 }
 0x3d1   : > { %847 = vadd.xlane.f32.xlu1 %v846_v14  ;;  %850 = vadd.xlane.f32.xlu0 %v849_v15 }
 0x3d2   : > { %v2569_v16 = vpop.eup %2079  ;;  %1867 = vmatpush3.msra.mxu1 %v453_v36 }
 0x3d3   : > { %v2571_v18 = vpop.eup %2081  ;;  %v852_v19 = vsel %vm788_vm0, %v2569_v16, 0.0  ;;  %1868 = vmatprep.subr.mxu1 %v452_v60 }
 0x3d4   : > { %v855_v21 = vsel %vm788_vm0, %v2571_v18, 0.0  ;;  %1869 = vmatpush3.msra.mxu1 %v452_v60  ;;  %v462_v60 = vld [vmem:[%s2365_s12 + $0xb0] sm:$0xff] }
 0x3d5   : > { %853 = vadd.xlane.f32.xlu1 %v852_v19  ;;  %856 = vadd.xlane.f32.xlu0 %v855_v21 }
 0x3d6   : > { %v2084_v24 = vpop.eup %2083 }
 0x3d7   : > { %v858_v25 = vsel %vm788_vm0, %v2084_v24, 0.0 }
 0x3d9   : > { %859 = vadd.xlane.f32.xlu1 %v858_v25 }
 0x451   : > { %v839_v37 = vpop.xlane.xlu0 %838 }
 0x452   : > { %2085 = vrcp.f32 %v839_v37 }
 0x455   : > { %v845_v38 = vpop.xlane.xlu0 %844 }
 0x456   : > { %v842_v39 = vpop.xlane.xlu1 %841  ;;  %2087 = vrcp.f32 %v845_v38 }
 0x457   : > { %2089 = vrcp.f32 %v842_v39 }
 0x45a   : > { %v848_v40 = vpop.xlane.xlu1 %847  ;;  %v851_v41 = vpop.xlane.xlu0 %850 }
 0x45b   : > { %2091 = vrcp.f32 %v848_v40 }
 0x45c   : > { %2093 = vrcp.f32 %v851_v41 }
 0x45e   : > { %v854_v42 = vpop.xlane.xlu1 %853  ;;  %v857_v43 = vpop.xlane.xlu0 %856 }
 0x45f   : > { %v2086_v44 = vpop.eup %2085  ;;  %2095 = vrcp.f32 %v854_v42 }
 0x460   : > { %2097 = vrcp.f32 %v857_v43  ;;  %v869_v45 = vmul.f32 %v2086_v44, %v2549_v62  ;;  %v451_v62 = vld [vmem:[%s2365_s12 + $0x198] sm:$0xff]  ;;  %v474_v43 = vld [vmem:[%s2365_s12 + $0x2f0] sm:$0xff] }
 0x461   : > { %1870 = vmatprep.subr.mxu1 %v451_v62  ;;  %1891 = vmatprep.subr.mxu0 %v474_v43  ;;  %v472_v44 = vld [vmem:[%s2365_s12 + $0x290] sm:$0xff] }
 0x462   : > { %v860_v46 = vpop.xlane.xlu1 %859  ;;  %1844 = vmatprep.mubr.msk.f32.mxu0 %vm788_vm0, %v869_v45  ;;  %1871 = vmatpush3.msra.mxu1 %v451_v62  ;;  %v461_v62 = vld [vmem:[%s2365_s12 + $0x80] sm:$0xff] }
 0x463   : > { %v2088_v48 = vpop.eup %2087  ;;  %2099 = vrcp.f32 %v860_v46  ;;  %1872 = vmatprep.subr.mxu1 %v450_v63 }
 0x464   : > { %v2090_v49 = vpop.eup %2089  ;;  %v871_v50 = vmul.f32 %v2088_v48, %v2553_v2  ;;  %1873 = vmatpush3.msra.mxu1 %v450_v63  ;;  %v448_v2 = vld [vmem:[%s2365_s12 + $0x108] sm:$0xff]  ;;  %v460_v63 = vld [vmem:[%s2365_s12 + $0x50] sm:$0xff] }
 0x465   : > { %v870_v51 = vmul.f32 %v2090_v49, %v2555_v3  ;;  %1874 = vmatprep.subr.mxu1 %v449_v1  ;;  %v447_v3 = vld [vmem:[%s2365_s12 + $0xd8] sm:$0xff] }
 0x466   : > { %1875 = vmatpush3.msra.mxu1 %v449_v1  ;;  %v459_v1 = vld [vmem:[%s2365_s12 + $0x20] sm:$0xff] }
 0x467   : > { %1845 = vmatmul.mubr.msk.f32.vlgmr.msra.gmra.mxu0 %vm788_vm0, %v870_v51  ;;  %1876 = vmatprep.subr.mxu1 %v448_v2 }
 0x468   : > { %v2092_v52 = vpop.eup %2091  ;;  %1847 = vmatprep.mubr.msk.f32.mxu0 %vm788_vm0, %v871_v50  ;;  %1877 = vmatpush3.msra.mxu1 %v448_v2 }
 0x469   : > { %v2094_v8 = vpop.eup %2093  ;;  %v872_v53 = vmul.f32 %v2092_v52, %v2561_v12  ;;  %1878 = vmatprep.subr.mxu1 %v447_v3  ;;  %v444_v12 = vld [vmem:[%s2365_s12 + $0x48] sm:$0xff]  ;;  %1892 = vmatpush3.msra.mxu0 %v474_v43 }
 0x46a   : > { %v873_v54 = vmul.f32 %v2094_v8, %v2563_v13  ;;  %1879 = vmatpush3.msra.mxu1 %v447_v3  ;;  %v443_v13 = vld [vmem:[%s2365_s12 + $0x18] sm:$0xff] }
 0x46b   : > { %1848 = vmatmul.mubr.msk.f32.gmra.mxu0 %vm788_vm0, %v872_v53  ;;  %1880 = vmatprep.subr.mxu1 %v446_v9 }
 0x46c   : > { %v2096_v55 = vpop.eup %2095  ;;  %1850 = vmatprep.mubr.msk.f32.mxu0 %vm788_vm0, %v873_v54  ;;  %1881 = vmatpush3.msra.mxu1 %v446_v9  ;;  %v471_v54 = vld [vmem:[%s2365_s12 + $0x260] sm:$0xff] }
 0x46d   : > { %v2098_v56 = vpop.eup %2097  ;;  %v874_v57 = vmul.f32 %v2096_v55, %v2569_v16  ;;  %1882 = vmatprep.subr.mxu1 %v445_v10  ;;  %v468_v55 = vld [vmem:[%s2365_s12 + $0x1d0] sm:$0xff] }
 0x46e   : > { %v875_v58 = vmul.f32 %v2098_v56, %v2571_v18  ;;  %1883 = vmatpush3.msra.mxu1 %v445_v10  ;;  %v467_v56 = vld [vmem:[%s2365_s12 + $0x1a0] sm:$0xff] }
 0x46f   : > { %1851 = vmatmul.mubr.msk.f32.gmra.mxu0 %vm788_vm0, %v874_v57  ;;  %1884 = vmatprep.subr.mxu1 %v444_v12  ;;  %v466_v57 = vld [vmem:[%s2365_s12 + $0x170] sm:$0xff] }
 0x470   : > { %v2100_v59 = vpop.eup %2099  ;;  %1853 = vmatprep.mubr.msk.f32.mxu0 %vm788_vm0, %v875_v58  ;;  %1885 = vmatpush3.msra.mxu1 %v444_v12  ;;  %v465_v58 = vld [vmem:[%s2365_s12 + $0x140] sm:$0xff] }
 0x471   : > { %v876_v61 = vmul.f32 %v2100_v59, %v2084_v24  ;;  %1886 = vmatprep.subr.mxu1 %v443_v13  ;;  %v464_v59 = vld [vmem:[%s2365_s12 + $0x110] sm:$0xff] }
 0x472   : > { %1887 = vmatpush3.msra.mxu1 %v443_v13 }
 0x473   : > { %1854 = vmatmul.mubr.msk.f32.gmra.mxu0 %vm788_vm0, %v876_v61  ;;  %v463_v61 = vld [vmem:[%s2365_s12 + $0xe0] sm:$0xff] }
 0x527   : > { %v1846_v14 = vpop.f32.mrf.mxu0 }
 0x528   : > { %v1007_v28 = vmul.f32 %v1846_v14, %v2459_v22  ;;  %v1660_v22 = vld [vmem:[%s2376_s24 + $0x3] ss:$0 sm:$0xff] }
 0x529   : > { %v967_v15 = vpop.f32.mrf.mxu0 }
 0x52a   : > { %v1006_v24 = vmul.f32 %v967_v15, %v2451_v11  ;;  %v1661_v15 = vld [vmem:[%s2376_s24 + $0x4] ss:$0 sm:$0xff] }
 0x52b   : > { %v1849_v16 = vpop.f32.mrf.mxu0 }
 0x52c   : > { %v1009_v20 = vmul.f32 %v1849_v16, %v2471_v26 }
 0x52d   : > { %v977_v17 = vpop.f32.mrf.mxu0 }
 0x52e   : > { %v1008_v19 = vmul.f32 %v977_v17, %v2464_v23  ;;  %v1015_v35 = vadd.f32 %v1009_v20, %v1007_v28  ;;  %v1662_v20 = vld [vmem:[%s2376_s24 + $0x5] ss:$0 sm:$0xff]  ;;  %v490_v28 = vld [vmem:[%s2365_s12 + $0x2f8] sm:$0xff] }
 0x52f   : > { %v1852_v18 = vpop.f32.mrf.mxu0  ;;  %1926 = vmatprep.subr.mxu1 %v490_v28 }
 0x530   : > { %v1011_v29 = vmul.f32 %v1852_v18, %v2483_v30  ;;  %v1014_v33 = vadd.f32 %v1008_v19, %v1006_v24 }
 0x531   : > { %v987_v21 = vpop.f32.mrf.mxu0 }
 0x532   : > { %v1010_v25 = vmul.f32 %v987_v21, %v2476_v27  ;;  %v1017_v26 = vadd.f32 %v1015_v35, %v1011_v29  ;;  %v489_v29 = vld [vmem:[%s2365_s12 + $0x2c8] sm:$0xff]  ;;  %v486_v35 = vld [vmem:[%s2365_s12 + $0x238] sm:$0xff] }
 0x533   : > { %v1855_v32 = vpop.f32.mrf.mxu0 }
 0x534   : > { %v1013_v36 = vmul.f32 %v1855_v32, %v2495_v34  ;;  %v1016_v38 = vadd.f32 %v1014_v33, %v1010_v25  ;;  %v488_v32 = vld [vmem:[%s2365_s12 + $0x298] sm:$0xff]  ;;  %v487_v33 = vld [vmem:[%s2365_s12 + $0x268] sm:$0xff] }
 0x535   : > { %v997_v37 = vpop.f32.mrf.mxu0 }
 0x536   : > { %v1012_v23 = vmul.f32 %v997_v37, %v2488_v31  ;;  %v1019_v39 = vadd.f32 %v1017_v26, %v1013_v36  ;;  %v473_v31 = vld [vmem:[%s2365_s12 + $0x2c0] sm:$0xff]  ;;  %v485_v36 = vld [vmem:[%s2365_s12 + $0x208] sm:$0xff]  ;;  %v484_v37 = vld [vmem:[%s2365_s12 + $0x1d8] sm:$0xff] }
 0x537   : > { %1893 = vmatprep.subr.mxu0 %v473_v31  ;;  %v481_v26 = vld [vmem:[%s2365_s12 + $0x148] sm:$0xff] }
 0x538   : > { %v1018_v11 = vadd.f32 %v1016_v38, %v1012_v23  ;;  %1894 = vmatpush3.msra.mxu0 %v473_v31  ;;  %v483_v38 = vld [vmem:[%s2365_s12 + $0x1a8] sm:$0xff]  ;;  %v482_v23 = vld [vmem:[%s2365_s12 + $0x178] sm:$0xff] }
 0x539   : > { %1895 = vmatprep.subr.mxu0 %v472_v44 }
 0x53a   : > { %1888 = vmatprep.mubr.f32.mxu1 %v1018_v11  ;;  %1896 = vmatpush3.msra.mxu0 %v472_v44  ;;  %v480_v11 = vld [vmem:[%s2365_s12 + $0x118] sm:$0xff] }
 0x53b   : > { %1889 = vmatmul.mubr.f32.vlgmr.msra.gmra.mxu1 %v1019_v39  ;;  %1897 = vmatprep.subr.mxu0 %v471_v54  ;;  %v479_v39 = vld [vmem:[%s2365_s12 + $0xe8] sm:$0xff] }
 0x53c   : > { %1898 = vmatpush3.msra.mxu0 %v471_v54  ;;  %1927 = vmatpush3.msra.mxu1 %v490_v28 }
 0x53d   : > { %1928 = vmatprep.subr.mxu1 %v489_v29 }
 0x53e   : > { %1929 = vmatpush3.msra.mxu1 %v489_v29 }
 0x53f   : > { %1930 = vmatprep.subr.mxu1 %v488_v32 }
 0x540   : > { %1931 = vmatpush3.msra.mxu1 %v488_v32  ;;  %v1665_v32 = vld [vmem:[%s2376_s24 + $0x8] ss:$0 sm:$0xff] }
 0x541   : > { %1932 = vmatprep.subr.mxu1 %v487_v33 }
 0x542   : > { %1933 = vmatpush3.msra.mxu1 %v487_v33 }
 0x543   : > { %1934 = vmatprep.subr.mxu1 %v486_v35 }
 0x544   : > { %1935 = vmatpush3.msra.mxu1 %v486_v35 }
 0x545   : > { %1936 = vmatprep.subr.mxu1 %v485_v36 }
 0x546   : > { %1937 = vmatpush3.msra.mxu1 %v485_v36  ;;  %v1666_v36 = vld [vmem:[%s2376_s24 + $0x9] ss:$0 sm:$0xff] }
 0x547   : > { %1938 = vmatprep.subr.mxu1 %v484_v37 }
 0x548   : > { %1939 = vmatpush3.msra.mxu1 %v484_v37 }
 0x549   : > { %1940 = vmatprep.subr.mxu1 %v483_v38 }
 0x54a   : > { %1941 = vmatpush3.msra.mxu1 %v483_v38 }
 0x54b   : > { %1942 = vmatprep.subr.mxu1 %v482_v23 }
 0x54c   : > { %1943 = vmatpush3.msra.mxu1 %v482_v23 }
 0x54d   : > { %1944 = vmatprep.subr.mxu1 %v481_v26 }
 0x54e   : > { %1945 = vmatpush3.msra.mxu1 %v481_v26 }
 0x54f   : > { %1946 = vmatprep.subr.mxu1 %v480_v11 }
 0x550   : > { %1947 = vmatpush3.msra.mxu1 %v480_v11 }
 0x551   : > { %1948 = vmatprep.subr.mxu1 %v479_v39 }
 0x552   : > { %1949 = vmatpush3.msra.mxu1 %v479_v39 }
 0x5fb   : > { %v1890_v27 = vpop.f32.mrf.mxu1 }
 0x5fc   : > { %v1098_v30 = vadd.f32 %v1890_v27, %v1660_v22  ;;  %v477_v27 = vld [vmem:[%s2365_s12 + $0x88] sm:$0xff] }
 0x5fd   : > { %v1092_v40 = vpop.f32.mrf.mxu1 }
 0x5fe   : > { %v1093_v41 = vadd.f32 %v1660_v22, %v1092_v40  ;;  %v1102_v42 = vadd.f32 %v1098_v30, %v2435_v4  ;;  %v2626_v4 = vrot.slane %v2381_v0, %v502_v7  ;;  %v470_v0 = vld [vmem:[%s2365_s12 + $0x230] sm:$0xff]  ;;  %v469_v7 = vld [vmem:[%s2365_s12 + $0x200] sm:$0xff]  ;;  %v478_v22 = vld [vmem:[%s2365_s12 + $0xb8] sm:$0xff] }
 0x5ff   : > { %1899 = vmatprep.subr.mxu0 %v470_v0  ;;  %1950 = vmatprep.subr.mxu1 %v478_v22  ;;  %v476_v30 = vld [vmem:[%s2365_s12 + $0x58] sm:$0xff]  ;;  %v475_v40 = vld [vmem:[%s2365_s12 + $0x28] sm:$0xff] }
 0x600   : > { %1105 = vadd.xlane.f32.xlu1 %v1102_v42  ;;  %v1101_v34 = vadd.f32 %v1093_v41, %v2411_v47  ;;  %1900 = vmatpush3.msra.mxu0 %v470_v0  ;;  %v1663_v41 = vld [vmem:[%s2376_s24 + $0x6] ss:$0 sm:$0xff] }
 0x601   : > { %1901 = vmatprep.subr.mxu0 %v469_v7  ;;  %1951 = vmatpush3.msra.mxu1 %v478_v22 }
 0x602   : > { %1103 = vadd.xlane.f32.xlu0 %v1101_v34  ;;  %1902 = vmatpush3.msra.mxu0 %v469_v7 }
 0x603   : > { %1903 = vmatprep.subr.mxu0 %v468_v55  ;;  %1952 = vmatprep.subr.mxu1 %v477_v27 }
 0x604   : > { %1904 = vmatpush3.msra.mxu0 %v468_v55  ;;  %1953 = vmatpush3.msra.mxu1 %v477_v27 }
 0x605   : > { %1905 = vmatprep.subr.mxu0 %v467_v56  ;;  %1954 = vmatprep.subr.mxu1 %v476_v30 }
 0x606   : > { %1906 = vmatpush3.msra.mxu0 %v467_v56  ;;  %1955 = vmatpush3.msra.mxu1 %v476_v30 }
 0x607   : > { %1907 = vmatprep.subr.mxu0 %v466_v57  ;;  %1956 = vmatprep.subr.mxu1 %v475_v40 }
 0x608   : > { %1908 = vmatpush3.msra.mxu0 %v466_v57  ;;  %1957 = vmatpush3.msra.mxu1 %v475_v40 }
 0x609   : > { %1909 = vmatprep.subr.mxu0 %v465_v58 }
 0x60a   : > { %1910 = vmatpush3.msra.mxu0 %v465_v58 }
 0x60b   : > { %1911 = vmatprep.subr.mxu0 %v464_v59 }
 0x60c   : > { %1912 = vmatpush3.msra.mxu0 %v464_v59  ;;  %v1664_v59 = vld [vmem:[%s2376_s24 + $0x7] ss:$0 sm:$0xff] }
 0x60d   : > { %1913 = vmatprep.subr.mxu0 %v463_v61 }
 0x60e   : > { %1914 = vmatpush3.msra.mxu0 %v463_v61 }
 0x60f   : > { %1915 = vmatprep.subr.mxu0 %v462_v60 }
 0x610   : > { %1916 = vmatpush3.msra.mxu0 %v462_v60 }
 0x611   : > { %1917 = vmatprep.subr.mxu0 %v461_v62 }
 0x612   : > { %1918 = vmatpush3.msra.mxu0 %v461_v62 }
 0x613   : > { %1919 = vmatprep.subr.mxu0 %v460_v63 }
 0x614   : > { %1920 = vmatpush3.msra.mxu0 %v460_v63 }
 0x615   : > { %1921 = vmatprep.subr.mxu0 %v459_v1 }
 0x616   : > { %1922 = vmatpush3.msra.mxu0 %v459_v1 }
 0x689   : > { %v1106_v45 = vpop.xlane.xlu1 %1105 }
 0x68a   : > { %v1108_v46 = vmul.f32 0.03125, %v1106_v45 }
 0x68b   : > { %v1104_v47 = vpop.xlane.xlu0 %1103 }
 0x68c   : > { %v1110_v48 = vsub.f32 %v1102_v42, %v1108_v46  ;;  %v1107_v49 = vmul.f32 0.03125, %v1104_v47 }
 0x68e   : > { %v1109_v50 = vsub.f32 %v1101_v34, %v1107_v49  ;;  %v1118_v51 = vmul.f32 %v2626_v4, %v1110_v48 }
 0x690   : > { %v1120_v52 = vmul.f32 %v1118_v51, %v1118_v51  ;;  %v1117_v8 = vmul.f32 %v2626_v4, %v1109_v50 }
 0x692   : > { %1123 = vadd.xlane.f32.xlu1 %v1120_v52  ;;  %v1119_v53 = vmul.f32 %v1117_v8, %v1117_v8 }
 0x694   : > { %1121 = vadd.xlane.f32.xlu0 %v1119_v53 }
 0x71b   : > { %v1124_v2 = vpop.xlane.xlu1 %1123 }
 0x71c   : > { %v1126_v3 = vmul.f32 0.03125, %v1124_v2 }
 0x71d   : > { %v1122_v9 = vpop.xlane.xlu0 %1121 }
 0x71e   : > { %v1128_v10 = vadd.f32 1e-12, %v1126_v3  ;;  %v1125_v12 = vmul.f32 0.03125, %v1122_v9 }
 0x720   : > { %2101 = vrsqrt.f32 %v1128_v10  ;;  %v1127_v13 = vadd.f32 1e-12, %v1125_v12 }
 0x722   : > { %2103 = vrsqrt.f32 %v1127_v13 }
 0x72d   : > { %v2102_v14 = vpop.eup %2101 }
 0x72e   : > { %v1132_v16 = vmul.f32 %v2102_v14, %v1118_v51 }
 0x72f   : > { %v2104_v17 = vpop.eup %2103 }
 0x730   : > { %v1131_v18 = vmul.f32 %v2104_v17, %v1117_v8  ;;  %v1140_v19 = vmul.f32 %v1661_v15, %v1132_v16 }
 0x732   : > { %v1139_v21 = vmul.f32 %v1661_v15, %v1131_v18  ;;  %v2647_v25 = vadd.f32 %v1662_v20, %v1140_v19 }
 0x734   : > { %v2645_v24 = vadd.f32 %v1662_v20, %v1139_v21 }
 0x736   : > { %1923 = vmatprep.mubr.f32.mxu0 %v2645_v24 }
 0x737   : > { %1924 = vmatmul.mubr.f32.vlgmr.msra.gmra.mxu0 %v2647_v25 }
 0x7f7   : > { %v1925_v42 = vpop.f32.mrf.mxu0 }
 0x7f8   : > { %v1227_v34 = vadd.f32 %v1925_v42, %v1663_v41 }
 0x7f9   : > { %v1221_v43 = vpop.f32.mrf.mxu0 }
 0x7fa   : > { %v1231_v31 = vmul.f32 %v1227_v34, %v1227_v34  ;;  %v1222_v44 = vadd.f32 %v1663_v41, %v1221_v43 }
 0x7fc   : > { %v1233_v45 = vmul.f32 %v1231_v31, %v1227_v34  ;;  %v1230_v46 = vmul.f32 %v1222_v44, %v1222_v44 }
 0x7fe   : > { %v1235_v47 = vmul.f32 0.044715, %v1233_v45  ;;  %v1232_v48 = vmul.f32 %v1230_v46, %v1222_v44 }
 0x800   : > { %v1237_v49 = vadd.f32 %v1235_v47, %v1227_v34  ;;  %v1234_v50 = vmul.f32 0.044715, %v1232_v48 }
 0x802   : > { %v1239_v51 = vmul.f32 0.7978846, %v1237_v49  ;;  %v1236_v52 = vadd.f32 %v1234_v50, %v1222_v44 }
 0x804   : > { %2105 = vtanh.f32 %v1239_v51  ;;  %v1238_v8 = vmul.f32 0.7978846, %v1236_v52 }
 0x806   : > { %2107 = vtanh.f32 %v1238_v8 }
 0x811   : > { %v2106_v53 = vpop.eup %2105 }
 0x812   : > { %v1243_v54 = vadd.f32 1.0, %v2106_v53 }
 0x813   : > { %v2108_v0 = vpop.eup %2107 }
 0x814   : > { %v1242_v7 = vadd.f32 1.0, %v2108_v0  ;;  %v1245_v55 = vmul.f32 0.5, %v1243_v54 }
 0x816   : > { %v1244_v56 = vmul.f32 0.5, %v1242_v7  ;;  %v1247_v58 = vmul.f32 %v1245_v55, %v1227_v34 }
 0x818   : > { %v1246_v57 = vmul.f32 %v1244_v56, %v1222_v44 }
 0x81a   : > { %1958 = vmatprep.mubr.f32.mxu1 %v1246_v57 }
 0x81b   : > { %1959 = vmatmul.mubr.f32.vlgmr.msra.gmra.mxu1 %v1247_v58 }
 0x8db   : > { %v1960_v61 = vpop.f32.mrf.mxu1 }
 0x8dc   : > { %v1326_v60 = vadd.f32 %v1960_v61, %v1664_v59 }
 0x8dd   : > { %v1320_v62 = vpop.f32.mrf.mxu1 }
 0x8de   : > { %v1321_v63 = vadd.f32 %v1664_v59, %v1320_v62  ;;  %v1330_v1 = vadd.f32 %v1326_v60, %v2647_v25 }
 0x8e0   : > { %1333 = vadd.xlane.f32.xlu1 %v1330_v1  ;;  %v1329_v2 = vadd.f32 %v1321_v63, %v2645_v24 }
 0x8e2   : > { %1331 = vadd.xlane.f32.xlu0 %v1329_v2 }
 0x969   : > { %v1334_v3 = vpop.xlane.xlu1 %1333 }
 0x96a   : > { %v1336_v9 = vmul.f32 0.03125, %v1334_v3 }
 0x96b   : > { %v1332_v10 = vpop.xlane.xlu0 %1331 }
 0x96c   : > { %v1338_v12 = vsub.f32 %v1330_v1, %v1336_v9  ;;  %v1335_v13 = vmul.f32 0.03125, %v1332_v10 }
 0x96e   : > { %v1337_v14 = vsub.f32 %v1329_v2, %v1335_v13  ;;  %v1340_v15 = vmul.f32 %v1338_v12, %v2626_v4 }
 0x970   : > { %v1342_v16 = vmul.f32 %v1340_v15, %v1340_v15  ;;  %v1339_v17 = vmul.f32 %v1337_v14, %v2626_v4 }
 0x972   : > { %1345 = vadd.xlane.f32.xlu1 %v1342_v16  ;;  %v1341_v18 = vmul.f32 %v1339_v17, %v1339_v17 }
 0x974   : > { %1343 = vadd.xlane.f32.xlu0 %v1341_v18 }
 0x9fb   : > { %v1346_v19 = vpop.xlane.xlu1 %1345 }
 0x9fc   : > { %v1348_v20 = vmul.f32 0.03125, %v1346_v19 }
 0x9fd   : > { %v1344_v21 = vpop.xlane.xlu0 %1343 }
 0x9fe   : > { %v1350_v24 = vadd.f32 1e-12, %v1348_v20  ;;  %v1347_v25 = vmul.f32 0.03125, %v1344_v21 }
 0xa00   : > { %2109 = vrsqrt.f32 %v1350_v24  ;;  %v1349_v28 = vadd.f32 1e-12, %v1347_v25 }
 0xa02   : > { %2111 = vrsqrt.f32 %v1349_v28 }
 0xa0d   : > { %v2110_v29 = vpop.eup %2109 }
 0xa0e   : > { %v1354_v33 = vmul.f32 %v2110_v29, %v1340_v15 }
 0xa0f   : > { %v2112_v35 = vpop.eup %2111 }
 0xa10   : > { %v1362_v37 = vmul.f32 %v1665_v32, %v1354_v33  ;;  %v1353_v38 = vmul.f32 %v2112_v35, %v1339_v17 }
 0xa12   : > { %v1370_v4 = vadd.f32 %v1666_v36, %v1362_v37  ;;  %v1361_v23 = vmul.f32 %v1665_v32, %v1353_v38  ;;  %1376 = sbr.rel (%p1667_p1) target bundleno = 2977 (0xba1), region = 60 }
 0xa14   : > { %1372 = vst [vmem:[#allocation2 + $0x8] sm:$0xff] %v1370_v4  ;;  %v1369_v26 = vadd.f32 %v1666_v36, %v1361_v23 }
 0xa16   : > { %1371 = vst [vmem:[#allocation2] sm:$0xff] %v1369_v26 }
 0xa17   : > { %v1380_v11 = vand.u32 127, %v500_v5  ;;  %v1381_v39 = vmul.u32 8, %v2439_v6  ;;  %v1473_v22 = vld [vmem:[%s2773_s5 + $0x78] sm:$0xff]  ;;  %v2237_v27 = vmov 0.0   ;;  %vm2238_vm1 = vmmov 0   ;;  %v1472_v30 = vld [vmem:[%s2773_s5 + $0x70] sm:$0xff] }
 0xa18   : > { %1961 = vmatprep.subr.mxu0 %v2237_v27  ;;  %1965 = vmatprep.mubr.msk.f32.mxu0 %vm2238_vm1, %v2237_v27  ;;  %v1471_v6 = vld [vmem:[%s2773_s5 + $0x68] sm:$0xff]  ;;  %v1470_v40 = vld [vmem:[%s2773_s5 + $0x60] sm:$0xff]  ;;  %v1469_v41 = vld [vmem:[%s2773_s5 + $0x58] sm:$0xff] }
 0xa19   : > { %1962 = vmatpush3.msra.mxu0 %v1370_v4  ;;  %vm1382_vm2 = vcmp.eq.s32.totalorder %v1380_v11, %v1381_v39  ;;  %1968 = vmatprep.subr.mxu1 %v2237_v27  ;;  %v1468_v42 = vld [vmem:[%s2773_s5 + $0x50] sm:$0xff]  ;;  %v1467_v34 = vld [vmem:[%s2773_s5 + $0x48] sm:$0xff]  ;;  %v1466_v43 = vld [vmem:[%s2773_s5 + $0x40] sm:$0xff] }
 0xa1a   : > { %1963 = vmatprep.subr.mxu0 %v2237_v27  ;;  %v1668_v5 = vsel %vm1382_vm2, 1.0, %v2237_v27  ;;  %1969 = vmatpush3.msra.mxu1 %v1473_v22  ;;  %v1465_v31 = vld [vmem:[%s2773_s5 + $0x38] sm:$0xff]  ;;  %v1464_v44 = vld [vmem:[%s2773_s5 + $0x30] sm:$0xff]  ;;  %v1463_v45 = vld [vmem:[%s2773_s5 + $0x28] sm:$0xff] }
 0xa1b   : > { %1964 = vmatpush3.msra.mxu0 %v1369_v26  ;;  %1970 = vmatprep.subr.mxu1 %v2237_v27  ;;  %v1462_v46 = vld [vmem:[%s2773_s5 + $0x20] sm:$0xff]  ;;  %v1461_v47 = vld [vmem:[%s2773_s5 + $0x18] sm:$0xff]  ;;  %v1460_v48 = vld [vmem:[%s2773_s5 + $0x10] sm:$0xff] }
 0xa1c   : > { %1966 = vmatmul.mubr.msk.f32.vlgmr.msra.gmra.mxu0 %vm788_vm0, %v1668_v5  ;;  %1971 = vmatpush3.msra.mxu1 %v1472_v30  ;;  %v1459_v49 = vld [vmem:[%s2773_s5 + $0x8] sm:$0xff]  ;;  %v1458_v50 = vld [vmem:[%s2773_s5] sm:$0xff] }
 0xa1d   : > { %1972 = vmatprep.subr.mxu1 %v2237_v27  ;;  %2000 = vmatprep.mubr.msk.f32.mxu1 %vm2238_vm1, %v2237_v27  ;;  %v1670_v8 = vld [vmem:[%s2774_s6 + $0x2] ss:$0 sm:$0xff] }
 0xa1e   : > { %1973 = vmatpush3.msra.mxu1 %v1471_v6 }
 0xa1f   : > { %1974 = vmatprep.subr.mxu1 %v2237_v27 }
 0xa20   : > { %1975 = vmatpush3.msra.mxu1 %v1470_v40 }
 0xa21   : > { %1976 = vmatprep.subr.mxu1 %v2237_v27 }
 0xa22   : > { %1977 = vmatpush3.msra.mxu1 %v1469_v41 }
 0xa23   : > { %1978 = vmatprep.subr.mxu1 %v2237_v27 }
 0xa24   : > { %1979 = vmatpush3.msra.mxu1 %v1468_v42 }
 0xa25   : > { %1980 = vmatprep.subr.mxu1 %v2237_v27 }
 0xa26   : > { %1981 = vmatpush3.msra.mxu1 %v1467_v34 }
 0xa27   : > { %1982 = vmatprep.subr.mxu1 %v2237_v27 }
 0xa28   : > { %1983 = vmatpush3.msra.mxu1 %v1466_v43 }
 0xa29   : > { %1984 = vmatprep.subr.mxu1 %v2237_v27 }
 0xa2a   : > { %1985 = vmatpush3.msra.mxu1 %v1465_v31 }
 0xa2b   : > { %1986 = vmatprep.subr.mxu1 %v2237_v27 }
 0xa2c   : > { %1987 = vmatpush3.msra.mxu1 %v1464_v44 }
 0xa2d   : > { %1988 = vmatprep.subr.mxu1 %v2237_v27 }
 0xa2e   : > { %1989 = vmatpush3.msra.mxu1 %v1463_v45 }
 0xa2f   : > { %1990 = vmatprep.subr.mxu1 %v2237_v27 }
 0xa30   : > { %1991 = vmatpush3.msra.mxu1 %v1462_v46 }
 0xa31   : > { %1992 = vmatprep.subr.mxu1 %v2237_v27 }
 0xa32   : > { %1993 = vmatpush3.msra.mxu1 %v1461_v47 }
 0xa33   : > { %1994 = vmatprep.subr.mxu1 %v2237_v27 }
 0xa34   : > { %1995 = vmatpush3.msra.mxu1 %v1460_v48 }
 0xa35   : > { %1996 = vmatprep.subr.mxu1 %v2237_v27 }
 0xa36   : > { %1997 = vmatpush3.msra.mxu1 %v1459_v49 }
 0xa37   : > { %1998 = vmatprep.subr.mxu1 %v2237_v27 }
 0xa38   : > { %1999 = vmatpush3.msra.mxu1 %v1458_v50 }
 0xadc   : > { %v1454_v51 = vpop.f32.mrf.mxu0 }
 0xadd   : > { %1552 = vst [vmem:[#allocation7] sm:$0x3] %v1454_v51  ;;  %2001 = vmatmul.mubr.f32.vlgmr.msra.gmra.mxu1 %v1454_v51 }
 0xade   : > { %v1967_v52 = vpop.f32.mrf.mxu0 }
 0xb9d   : > { %v1547_v53 = vpop.f32.mrf.mxu1 }
 0xb9e   : > { %v1548_v54 = vadd.f32 %v1670_v8, %v1547_v53 }
 0xb9f   : > { %v2002_v0 = vpop.f32.mrf.mxu1 }
 0xba0   : > { %1551 = vst [vmem:[#allocation6] sm:$0x3] %v1548_v54 }
 0xba1 PF: > { %p2022_p2 = scmp.eq.s32.totalorder %s2305_s9, 1  ;;  %s2239_s12 = smov [#allocation6]  }
 0xba2   : > { %s1560_s21 = sshll.u32 %s2239_s12, 4  ;;  %s2240_s24 = smov [#allocation7]   ;;  %s1561_s21 = int_to_ptr.vmem [resolvable:$true] %s1560_s21 }
 0xba3   : > { %s1571_s30 = sshll.u32 %s2240_s24, 4  ;;  %s2141_s23 = scalar_lea.vmem %s1561_s21, 32  ;;  %s1572_s30 = int_to_ptr.vmem [resolvable:$true] %s1571_s30 }
 0xba4   : > { %p2142_p3 = scmp.ne.s32.totalorder %s1561_s21, %s2141_s23  ;;  %p2148_p6 = scmp.lt.s32.totalorder %s1561_s21, %s1561_s21 }
 0xba5   : > { %p2149_p10 = scmp.lt.s32.totalorder %s2141_s23, %s2141_s23 }
 0xba6   : > { %p2143_p4 = pnand %p2142_p3, %p2022_p2 }
 0xba7   : > { %p2150_p12 = por %p2149_p10, %p2148_p6 }
 0xba8   : > { %p2144_p5 = pneg %p2143_p4 }
 0xbaa   : > { %p2151_p11 = pnand %p2150_p12, %p2144_p5 }
 0xbac   : > { %2154 = shalt.err (!%p2151_p11)
}
 0xbad   : > { %2010 = dma.vmem_to_hbm [thread:$0]  (%p2022_p2), %s1561_s21, 32, %s2775_s7, [#allocation5]  }
 0xbae   : > { %s2165_s14 = scalar_lea.vmem %s1572_s30, 32  ;;  %p2172_p9 = scmp.lt.s32.totalorder %s1572_s30, %s1572_s30 }
 0xbaf   : > { %p2166_p13 = scmp.ne.s32.totalorder %s1572_s30, %s2165_s14  ;;  %p2173_p8 = scmp.lt.s32.totalorder %s2165_s14, %s2165_s14 }
 0xbb1   : > { %p2167_p0 = pnand %p2166_p13, %p2022_p2  ;;  %p2174_p1 = por %p2173_p8, %p2172_p9 }
 0xbb3   : > { %p2168_p7 = pneg %p2167_p0 }
 0xbb5   : > { %p2175_p3 = pnand %p2174_p1, %p2168_p7 }
 0xbb7   : > { %2178 = shalt.err (!%p2175_p3)
}
 0xbb8   : > { %2012 = dma.vmem_to_hbm [thread:$0]  (%p2022_p2), %s1572_s30, 32, %s2776_s8, [#allocation8]  }
 0xbb9   : > { %2210 = dma.done.wait (%p2022_p2), [#allocation5], 32  }
 0xbba   : > { %2212 = vsyncadd (%p2022_p2), [#allocation5], 4294967264 }
 0xbbb   : > { %2214 = dma.done.wait (%p2022_p2), [#allocation8], 32  }
 0xbbc   : > { %2216 = vsyncadd (%p2022_p2), [#allocation8], 4294967264 }
 0xbbd PF: > { %p21_p4 = scmp.ge.s32.totalorder %s2308_s10, 4   ;;  %s2782_s27 = smov %s2223_s28 }
 0xbbe   : > { %s2783_s28 = smov %s2227_s29  ;;  %s2784_s29 = smov %s2318_s13 }
 0xbbf   : > { %s2785_s30 = smov %s2308_s10  ;;  %23 = sbr.rel (!%p21_p4) target bundleno = 5 (0x5), region = 104 }
 0xbc4   :  { %1588 = vsyncpa [#allocation4], 1 }
 0xbc5   :  { %1590 = vsyncpa [#allocation4 + $0x1], 1 }
 0xbc6   :  { %1591 = vsyncpa [#allocation5], 1 }
 0xbc7   :  { %1593 = vsyncpa [#allocation5 + $0x1], 1 }
 0xbc8   :  { %1594 = vsyncpa [#allocation8], 1 }

</bundles_post_ra>
